<compile_context>
chip_gen: v6e
topology: v6e:2x2x1
jax: 0.10.0
libtpu: 0.0.40
codegen_flags: <defaults>
</compile_context>

<pallas_src>
import functools

import jax
import jax.numpy as jnp
from jax.experimental import pallas as pl
from jax.experimental.pallas import tpu as pltpu


def _llama_mlp_kernel(x_ref, wgu_ref, wd_ref, o_ref, acc_ref, *, ti):
    """One (token-tile i, intermediate-tile j) grid step.

    x_ref   : (tm, H)      VMEM  -- token tile (resident across j)
    wgu_ref : (H, 2*ti)    VMEM  -- fused [gate_j | up_j] weight slab
    wd_ref  : (ti, H)      VMEM  -- down-projection slab for tile j
    o_ref   : (tm, H)      VMEM  -- output tile (written on last j)
    acc_ref : (tm, H) f32  VMEM scratch accumulator
    """
    j = pl.program_id(1)

    @pl.when(j == 0)
    def _():
        acc_ref[...] = jnp.zeros_like(acc_ref)

    x = x_ref[...]

    # Fused gate/up projection for this I-tile (MXU, f32 accumulation).
    gu = jnp.dot(x, wgu_ref[...], preferred_element_type=jnp.float32)  # (tm, 2*ti)
    gate = gu[:, :ti]
    up = gu[:, ti:]

    # SiluAndMul in f32 (VPU + EUP).
    h = gate * jax.nn.sigmoid(gate) * up

    # Partial down projection, accumulate in f32.
    acc_ref[...] += jnp.dot(h.astype(wd_ref.dtype), wd_ref[...],
                            preferred_element_type=jnp.float32)

    @pl.when(j == pl.num_programs(1) - 1)
    def _():
        o_ref[...] = acc_ref[...].astype(o_ref.dtype)


def prepare_llama_mlp_weights(w_gate_up, w_down, *, ti):
    """One-time repack of PyTorch (out_features, in_features) weights.

    Must be called OUTSIDE the jitted forward (at weight-load time) so the
    transposes are not materialized in HBM on every call.

    Assumes vLLM MergedColumnParallelLinear layout: w_gate_up = [gate; up]
    stacked along dim 0 (gate first, then up).

    Returns:
      wgu : (H, 2*I)  per-I-tile interleaved [gate_j | up_j] slabs of width 2*ti
      wd  : (I, H)    input-major down-projection weight
    """
    two_I, H = w_gate_up.shape
    I = two_I // 2
    assert I % ti == 0, f"intermediate size {I} must be a multiple of ti={ti}"
    n_j = I // ti

    gate_t = w_gate_up[:I, :].T.reshape(H, n_j, ti)   # (H, n_j, ti)
    up_t = w_gate_up[I:, :].T.reshape(H, n_j, ti)     # (H, n_j, ti)
    # Tile j of wgu (columns [2*j*ti, 2*(j+1)*ti)) is [gate_j | up_j].
    wgu = jnp.concatenate([gate_t, up_t], axis=-1).reshape(H, 2 * I)
    wd = w_down.T                                     # (I, H)
    return wgu, wd


@functools.partial(jax.jit, static_argnames=("tm", "ti"))
def llama_mlp(x, wgu, wd, *, tm=256, ti=512):
    """
    x   : [T, H]     activations
    wgu : [H, 2*I]   from prepare_llama_mlp_weights (same ti!)
    wd  : [I, H]     from prepare_llama_mlp_weights
    returns [T, H]

    Tile-size guidance:
      tm: 128 (v5e) / 256 (v6e, v7x) to fill the 256-wide MXU.
      ti: ~512-1024 on v5e/v6e (raise vmem_limit_bytes), ~256 on v7x (64 MiB VMEM).
    """
    T, H = x.shape
    I = wd.shape[0]
    assert I % ti == 0, f"I={I} must be a multiple of ti={ti}"
    assert wgu.shape == (H, 2 * I)

    # Pad tokens so no trailing tokens are dropped.
    T_pad = pl.cdiv(T, tm) * tm
    if T_pad != T:
        x = jnp.pad(x, ((0, T_pad - T), (0, 0)))

    grid = (T_pad // tm, I // ti)

    itemsize = jnp.dtype(x.dtype).itemsize
    cost = pl.CostEstimate(
        flops=2 * T_pad * H * (2 * I) + 2 * T_pad * I * H,
        transcendentals=T_pad * I,
        bytes_accessed=(T_pad * H * itemsize                      # x
                        + wgu.size * jnp.dtype(wgu.dtype).itemsize
                        + wd.size * jnp.dtype(wd.dtype).itemsize
                        + T_pad * H * itemsize),                  # out
    )

    out = pl.pallas_call(
        functools.partial(_llama_mlp_kernel, ti=ti),
        out_shape=jax.ShapeDtypeStruct((T_pad, H), x.dtype),
        grid_spec=pltpu.PrefetchScalarGridSpec(
            num_scalar_prefetch=0,
            grid=grid,
            in_specs=[
                pl.BlockSpec((tm, H), lambda i, j: (i, 0)),        # x token tile
                pl.BlockSpec((H, 2 * ti), lambda i, j: (0, j)),    # fused gate|up slab
                pl.BlockSpec((ti, H), lambda i, j: (j, 0)),        # down-proj slab
            ],
            out_specs=pl.BlockSpec((tm, H), lambda i, j: (i, 0)),
            scratch_shapes=[pltpu.VMEM((tm, H), jnp.float32)],
        ),
        compiler_params=pltpu.CompilerParams(
            # token axis parallel (megacore), I axis is the reduction -> arbitrary
            dimension_semantics=("parallel", "arbitrary"),
            # conservative cap that is valid on all generations; raise toward
            # ~96 MiB on v5e/v6e for larger ti.
            vmem_limit_bytes=64 << 20,
        ),
        cost_estimate=cost,
    )(x, wgu, wd)

    if T_pad != T:
        out = out[:T]
    return out


def llama_mlp_ref(x, w_gate_up, w_down):
    """Pure-JAX reference matching the PyTorch semantics exactly."""
    I = w_gate_up.shape[0] // 2
    gate_up = x @ w_gate_up.T                      # [T, 2I]
    gate, up = gate_up[:, :I], gate_up[:, I:]
    h = jax.nn.silu(gate) * up                     # SiluAndMul
    return h @ w_down.T                            # [T, H]


if __name__ == "__main__":
    # Small shapes consistent with the module: tokens=128, hidden=256, intermediate=512.
    T, H, I = 128, 256, 512
    tm, ti = 64, 256   # small tiles so the demo exercises both grid axes

    key = jax.random.PRNGKey(0)
    k1, k2, k3 = jax.random.split(key, 3)

    x = jax.random.normal(k1, (T, H), dtype=jnp.float32)
    # PyTorch (out_features, in_features) layouts; gate_up = [gate; up] stacked.
    w_gate_up = jax.random.normal(k2, (2 * I, H), dtype=jnp.float32) * 0.02
    w_down = jax.random.normal(k3, (H, I), dtype=jnp.float32) * 0.02

    # One-time weight repack (outside jit).
    wgu, wd = prepare_llama_mlp_weights(w_gate_up, w_down, ti=ti)

    out = llama_mlp(x, wgu, wd, tm=tm, ti=ti)
    out = jax.block_until_ready(out)

    ref = llama_mlp_ref(x, w_gate_up, w_down)
    assert out.shape == (T, H)
    assert jnp.allclose(out, ref, atol=1e-4, rtol=1e-4), "mismatch vs reference"

    # Also check the padding path (T not a multiple of tm).
    T2 = 100
    x2 = jax.random.normal(jax.random.PRNGKey(7), (T2, H), dtype=jnp.float32)
    out2 = jax.block_until_ready(llama_mlp(x2, wgu, wd, tm=tm, ti=ti))
    ref2 = llama_mlp_ref(x2, w_gate_up, w_down)
    assert out2.shape == (T2, H)
    assert jnp.allclose(out2, ref2, atol=1e-4, rtol=1e-4), "padded-T mismatch vs reference"

    print("KERNEL_OK")
</pallas_src>

<mosaic_0001>
module attributes {stable_mosaic.version = 11 : i64} {
  func.func @_llama_mlp_kernel(%arg0: i32, %arg1: i32, %arg2: memref<64x256xf32, #tpu.memory_space<vmem>>, %arg3: memref<256x512xf32, #tpu.memory_space<vmem>>, %arg4: memref<256x256xf32, #tpu.memory_space<vmem>>, %arg5: memref<64x256xf32, #tpu.memory_space<vmem>>, %arg6: memref<64x256xf32, #tpu.memory_space<vmem>>) attributes {dimension_semantics = [#tpu.dimension_semantics<parallel>, #tpu.dimension_semantics<arbitrary>], iteration_bounds = array<i64: 2, 2>, scalar_prefetch = 0 : i64, scratch_operands = 1 : i64, tpu.core_type = #tpu.core_type<tc>, window_params = [{transform_indices = @transform_0, window_bounds = array<i64: 64, 256>}, {transform_indices = @transform_1, window_bounds = array<i64: 256, 512>}, {transform_indices = @transform_2, window_bounds = array<i64: 256, 256>}, {transform_indices = @transform_3, window_bounds = array<i64: 64, 256>}]} {
    %c0_i32 = arith.constant 0 : i32
    %0 = arith.cmpi eq, %arg1, %c0_i32 : i32
    %1 = arith.extui %0 : i1 to i32
    %c0_i32_0 = arith.constant 0 : i32
    %2 = arith.cmpi ne, %1, %c0_i32_0 : i32
    scf.if %2 {
      %cst_13 = arith.constant 0.000000e+00 : f32
      %23 = vector.broadcast %cst_13 : f32 to vector<64x256xf32>
      %c0_14 = arith.constant 0 : index
      %c0_15 = arith.constant 0 : index
      %24 = vector.load %arg6[%c0_14, %c0_15] : memref<64x256xf32, #tpu.memory_space<vmem>>, vector<64x256xf32>
      tpu.vector_store %arg6[%c0_14, %c0_15], %23 {strides = array<i32>} : memref<64x256xf32, #tpu.memory_space<vmem>>, vector<64x256xf32>,
    } else {
    }
    %c0 = arith.constant 0 : index
    %c0_1 = arith.constant 0 : index
    %3 = vector.load %arg2[%c0, %c0_1] : memref<64x256xf32, #tpu.memory_space<vmem>>, vector<64x256xf32>
    %c0_2 = arith.constant 0 : index
    %c0_3 = arith.constant 0 : index
    %4 = vector.load %arg3[%c0_2, %c0_3] : memref<256x512xf32, #tpu.memory_space<vmem>>, vector<256x512xf32>
    %cst = arith.constant dense<0.000000e+00> : vector<64x512xf32>
    %5 = tpu.matmul %3, %4, %cst {dimension_numbers = #tpu.dot_dimension_numbers<[1], [0], [0], [1], [0, 0, 1, 1], [], []>} : vector<64x256xf32>, vector<256x512xf32>, vector<64x512xf32> -> vector<64x512xf32>
    %6 = vector.extract_strided_slice %5 {offsets = [0, 0], sizes = [64, 256], strides = [1, 1]} : vector<64x512xf32> to vector<64x256xf32>
    %7 = vector.extract_strided_slice %5 {offsets = [0, 256], sizes = [64, 256], strides = [1, 1]} : vector<64x512xf32> to vector<64x256xf32>
    %8 = arith.negf %6 : vector<64x256xf32>
    %9 = math.exp %8 : vector<64x256xf32>
    %cst_4 = arith.constant 1.000000e+00 : f32
    %10 = vector.broadcast %cst_4 : f32 to vector<64x256xf32>
    %11 = arith.addf %10, %9 : vector<64x256xf32>
    %12 = arith.divf %10, %11 : vector<64x256xf32>
    %13 = arith.mulf %6, %12 : vector<64x256xf32>
    %14 = arith.mulf %13, %7 : vector<64x256xf32>
    %c0_5 = arith.constant 0 : index
    %c0_6 = arith.constant 0 : index
    %15 = vector.load %arg6[%c0_5, %c0_6] : memref<64x256xf32, #tpu.memory_space<vmem>>, vector<64x256xf32>
    %c0_7 = arith.constant 0 : index
    %c0_8 = arith.constant 0 : index
    %16 = vector.load %arg4[%c0_7, %c0_8] : memref<256x256xf32, #tpu.memory_space<vmem>>, vector<256x256xf32>
    %cst_9 = arith.constant dense<0.000000e+00> : vector<64x256xf32>
    %17 = tpu.matmul %14, %16, %cst_9 {dimension_numbers = #tpu.dot_dimension_numbers<[1], [0], [0], [1], [0, 0, 1, 1], [], []>} : vector<64x256xf32>, vector<256x256xf32>, vector<64x256xf32> -> vector<64x256xf32>
    %18 = arith.addf %15, %17 : vector<64x256xf32>
    %c0_10 = arith.constant 0 : index
    %c0_11 = arith.constant 0 : index
    %19 = vector.load %arg6[%c0_10, %c0_11] : memref<64x256xf32, #tpu.memory_space<vmem>>, vector<64x256xf32>
    tpu.vector_store %arg6[%c0_10, %c0_11], %18 {strides = array<i32>} : memref<64x256xf32, #tpu.memory_space<vmem>>, vector<64x256xf32>,
    %c1_i32 = arith.constant 1 : i32
    %20 = arith.cmpi eq, %arg1, %c1_i32 : i32
    %21 = arith.extui %20 : i1 to i32
    %c0_i32_12 = arith.constant 0 : i32
    %22 = arith.cmpi ne, %21, %c0_i32_12 : i32
    scf.if %22 {
      %c0_13 = arith.constant 0 : index
      %c0_14 = arith.constant 0 : index
      %23 = vector.load %arg6[%c0_13, %c0_14] : memref<64x256xf32, #tpu.memory_space<vmem>>, vector<64x256xf32>
      %c0_15 = arith.constant 0 : index
      %c0_16 = arith.constant 0 : index
      %24 = vector.load %arg5[%c0_15, %c0_16] : memref<64x256xf32, #tpu.memory_space<vmem>>, vector<64x256xf32>
      tpu.vector_store %arg5[%c0_15, %c0_16], %23 {strides = array<i32>} : memref<64x256xf32, #tpu.memory_space<vmem>>, vector<64x256xf32>,
    } else {
    }
    return
  }
  func.func @transform_0(%arg0: i32, %arg1: i32) -> (i32, i32) {
    %c0_i32 = arith.constant 0 : i32
    %c0_i32_0 = arith.constant 0 : i32
    return %arg0, %c0_i32 : i32, i32
  }
  func.func @transform_1(%arg0: i32, %arg1: i32) -> (i32, i32) {
    %c0_i32 = arith.constant 0 : i32
    %c0_i32_0 = arith.constant 0 : i32
    return %c0_i32, %arg1 : i32, i32
  }
  func.func @transform_2(%arg0: i32, %arg1: i32) -> (i32, i32) {
    %c0_i32 = arith.constant 0 : i32
    %c0_i32_0 = arith.constant 0 : i32
    return %arg1, %c0_i32 : i32, i32
  }
  func.func @transform_3(%arg0: i32, %arg1: i32) -> (i32, i32) {
    %c0_i32 = arith.constant 0 : i32
    %c0_i32_0 = arith.constant 0 : i32
    return %arg0, %c0_i32 : i32, i32
  }
}

</mosaic_0001>

<bundles_post_ra>
// kernel: llama_mlp.1
= control target key start
LH: loop header
LB: loop body
LE: loop exit
PB: predicated region body
PF: predicated region fallthrough
CT: control target
= control target key end

     0   :  { %s2347_s0 = inlined_call_operand.hbm [shape: f32[128,256], index: 0, kind: input, shape index: {}]   ;;  %s2348_s1 = inlined_call_operand.hbm [shape: f32[256,1024], index: 1, kind: input, shape index: {}]   ;;  %s2349_s2 = inlined_call_operand.hbm [shape: f32[512,256], index: 2, kind: input, shape index: {}]   ;;  %s2350_s3 = inlined_call_operand.hbm [shape: f32[128,256], index: 3, kind: output, shape index: {}]  }
   0x1   :  { %2363 = sst [smem:[#allocation22_spill]] %s2347_s0 }
   0x2   :  { %2364 = sst [smem:[#allocation23_spill]] %s2348_s1 }
   0x3   :  { %2365 = sst [smem:[#allocation24_spill]] %s2350_s3 }
   0x4   :  { %8 = vsyncpa [#allocation4], 0 }
   0x5   :  { %10 = vsyncpa [#allocation4 + $0x1], 0 }
   0x6   :  { %11 = vsyncpa [#allocation7], 0 }
   0x7   :  { %13 = vsyncpa [#allocation7 + $0x1], 0 }
   0x8   :  { %14 = vsyncpa [#allocation5], 0 }
   0x9   :  { %16 = vsyncpa [#allocation5 + $0x1], 0  ;;  %s1746_s12 = smov 0   ;;  %s1748_s13 = smov 0  }
   0xa   :  { %s1750_s14 = smov 0   ;;  %s1752_s15 = smov 0  }
   0xb   :  { %s1754_s16 = smov 0   ;;  %s1756_s17 = smov 0  }
   0xc   :  { %s1758_s18 = smov 0   ;;  %s1760_s19 = smov 0  }
   0xd   :  { %s1762_s20 = smov 0   ;;  %s1764_s21 = smov 0  }
   0xe   :  { %s1766_s22 = smov 0  }
   0xf LB: > { %2366 = sst [smem:[#allocation13_spill]] %s1680_s14  ;;  %s31_s23 = sadd.s32 1, %s1704_s20  ;;  %s1712_s22 = sphi %s1766_s22, %s22_s22   ;;  %s1708_s21 = sphi %s1764_s21, %s2399_s21   ;;  %s1704_s20 = sphi %s1762_s20, %s2405_s20   ;;  %s1700_s19 = sphi %s1760_s19, %s2397_s19   ;;  %s1696_s18 = sphi %s1758_s18, %s2404_s18   ;;  %s1692_s17 = sphi %s1756_s17, %s2396_s17   ;;  %s1688_s16 = sphi %s1754_s16, %s2403_s16   ;;  %s1684_s15 = sphi %s1752_s15, %s2402_s15   ;;  %s1680_s14 = sphi %s1750_s14, %s2394_s14   ;;  %s1676_s13 = sphi %s1748_s13, %s2401_s13   ;;  %s1672_s12 = sphi %s1746_s12, %s2400_s12  }
  0x10   : > { %2367 = sst [smem:[#allocation14_spill]] %s1692_s17  ;;  %p49_p0 = scmp.eq.s32.totalorder %s1712_s22, 0 }
  0x11   : > { %2368 = sst [smem:[#allocation15_spill]] %s1708_s21  ;;  %p1803_p1 = scmp.ge.s32.totalorder %s31_s23, 2 }
  0x12   : > { %s67_s25 = sadd.s32 1, %s1680_s14  ;;  %p74_p2 = scmp.ne.s32.totalorder %s1680_s14, %s1676_s13 }
  0x13   : > { %p80_p3 = scmp.ne.s32.totalorder %s1676_s13, %s1672_s12  ;;  %s2407_s23 = smov (%p1803_p1, %s31_s23), 0 }
  0x14   : > { %2370 = sst [smem:[#allocation16_spill]] %s2407_s23  ;;  %p76_p4 = por %p74_p2, %p49_p0 }
  0x15   : > { %s64_s26 = ssub.s32 %s1704_s20, %s2407_s23  ;;  %p2353_p5 = scmp.lt.s32.totalorder %s1712_s22, 4 }
  0x16   : > { %p65_p6 = scmp.eq.s32.totalorder %s64_s26, 0  ;;  %s178_s27 = sand.u32 1, %s1712_s22  }
  0x17   : > { %s2352_s28 = sand.u32 1, %s1680_s14   ;;  %s1251_s4 = sshll.u32 %s1704_s20, 9 }
  0x18   : > { %s1824_s29 = scalar_select %p65_p6, %s1680_s14, %s67_s25  }
  0x19   : > { %s1213_s30 = sshll.u32 %s2352_s28, 10  ;;  %s2372_s1 = sld [smem:[#allocation23_spill]] }
  0x1a   : > { %2371 = sst [smem:[#allocation17_spill]] %s1824_s29  ;;  %s182_s8 = scalar_lea.vmem [#allocation6], %s1213_s30 }
  0x1b   : > { %s189_s9 = sshll.u32 %s182_s8, 4  ;;  %p1834_p7 = pnand %p2353_p5, %p76_p4  ;;  %s190_s9 = int_to_ptr.vmem [resolvable:$true] %s189_s9 }
  0x1c   : > { %p1220_p8 = scmp.ge.s32.totalorder %s1712_s22, 1  ;;  %s1839_s11 = scalar_lea.sflag [#allocation7], %s178_s27 }
  0x1d   : > { %p2351_p9 = pneg %p1834_p7  ;;  %s1517_s25 = scalar_lea.vmem %s190_s9, 16384 }
  0x1e   : > { %p1518_p10 = scmp.ne.s32.totalorder %s190_s9, %s1517_s25  ;;  %s1714_s26 = smov [#allocation6]  }
  0x1f   : > { %s188_s7 = scalar_lea.hbm %s2372_s1, %s1251_s4  ;;  %s1522_s30 = sshll.u32 %s1714_s26, 4  ;;  %s1523_s30 = int_to_ptr.vmem [resolvable:$false] %s1522_s30 }
  0x20   : > { %p1520_p11 = pnand %p1518_p10, %p2351_p9  ;;  %s1524_s4 = scalar_lea.vmem %s1523_s30, 32768 }
  0x21   : > { %p1525_p13 = scmp.lt.s32.totalorder %s190_s9, %s1523_s30  ;;  %p1526_p2 = scmp.lt.s32.totalorder %s1524_s4, %s1517_s25 }
  0x22   : > { %p1521_p12 = pneg %p1520_p11 }
  0x23   : > { %p1527_p4 = por %p1526_p2, %p1525_p13 }
  0x25   : > { %p1528_p6 = pnand %p1527_p4, %p1521_p12 }
  0x27   : > { %1531 = shalt.err (!%p1528_p6)
}
  0x28   : > { %s1715_s5 = smov 1024   ;;  %s1716_s27 = smov 512  }
  0x29   : > { %s1717_s6 = smov 32   ;;  %p219_p10 = scmp.lt.s32.totalorder %s1712_s22, 5 }
  0x2a   : > { %1334 = dma.hbm_to_vmem [thread:$0]  (!%p1834_p7), %s188_s7, 16384, %s190_s9, %s1839_s11, %s1715_s5, %s1716_s27, %s1717_s6  }
  0x2b   : > { %p1852_p11 = pnand %p1220_p8, %p219_p10  ;;  %s1857_s25 = sadd.s32 4294967295, %s1712_s22  }
  0x2c   : > { %s1206_s26 = sadd.s32 4294967294, %s1712_s22   ;;  %s34_s30 = sadd.s32 1, %s1708_s21 }
  0x2d   : > { %s41_s4 = sadd.s32 1, %s1692_s17  ;;  %s2409_s30 = smov (!%p1803_p1, %s34_s30), %s1708_s21 }
  0x2e   : > { %p48_p12 = scmp.ne.s32.totalorder %s1692_s17, %s1688_s16  ;;  %p54_p13 = scmp.ne.s32.totalorder %s1688_s16, %s1684_s15 }
  0x2f   : > { %p36_p8 = scmp.ge.s32.totalorder %s2409_s30, 2  ;;  %p55_p2 = scmp.eq.s32.totalorder %s1857_s25, 0 }
  0x30   : > { %p1872_p4 = por %p49_p0, %p48_p12  ;;  %p130_p6 = scmp.eq.s32.totalorder %s1857_s25, 3 }
  0x31   : > { %s2411_s30 = smov (%p36_p8, %s2409_s30), 0  ;;  %p1882_p1 = por %p55_p2, %p54_p13 }
  0x32   : > { %2376 = sst [smem:[#allocation18_spill]] %s2411_s30  ;;  %p1889_p10 = por %p80_p3, %p55_p2 }
  0x33   : > { %s38_s5 = ssub.s32 %s1708_s21, %s2411_s30  ;;  %p1895_p0 = por %p130_p6, %p48_p12 }
  0x34   : > { %p39_p9 = scmp.eq.s32.totalorder %s38_s5, 0  ;;  %p136_p8 = scmp.eq.s32.totalorder %s1206_s26, 3 }
  0x35   : > { %s2379_s27 = scalar_select %p1895_p0, 1, 0 }
  0x36   : > { %s156_s6 = sand.u32 1, %s1692_s17   ;;  %s1250_s28 = sshll.u32 %s1708_s21, 11 }
  0x37   : > { %2380 = sst [smem:[#allocation19_spill]] %s2379_s27  ;;  %p1907_p5 = por %p136_p8, %p54_p13 }
  0x38   : > { %s1902_s1 = scalar_select %p39_p9, %s1692_s17, %s41_s4  }
  0x39   : > { %s2382_s23 = scalar_select %p1907_p5, 1, 0 }
  0x3a   : > { %2381 = sst [smem:[#allocation20_spill]] %s1902_s1  ;;  %s1209_s12 = sshll.u32 %s156_s6, 7 }
  0x3b   : > { %2383 = sst [smem:[#allocation21_spill]] %s2382_s23  ;;  %p2385_p3 = scmp.lt.s32.totalorder %s1712_s22, 4 }
  0x3c   : > { %s2384_s0 = sld [smem:[#allocation22_spill]]  ;;  %s160_s26 = scalar_lea.vmem [#allocation3], %s1209_s12 }
  0x3d   : > { %p1918_p12 = pnand %p2385_p3, %p1872_p4  ;;  %s168_s4 = sshll.u32 %s160_s26, 4  ;;  %s169_s4 = int_to_ptr.vmem [resolvable:$true] %s168_s4 }
  0x3e   : > { %s2387_s5 = sand.u32 1, %s1680_s14   ;;  %s157_s1 = scalar_lea.sflag [#allocation4], %s156_s6 }
  0x3f   : > { %s1216_s21 = sshll.u32 %s2387_s5, 9  ;;  %p1534_p9 = pneg %p1918_p12 }
  0x40   : > { %s1545_s17 = scalar_lea.vmem %s169_s4, 2048  ;;  %s1718_s3 = smov [#allocation3]  }
  0x41   : > { %p1546_p13 = scmp.ne.s32.totalorder %s169_s4, %s1545_s17 }
  0x42   : > { %s167_s30 = scalar_lea.hbm %s2384_s0, %s1250_s28  ;;  %s1550_s28 = sshll.u32 %s1718_s3, 4  ;;  %s1551_s28 = int_to_ptr.vmem [resolvable:$false] %s1550_s28 }
  0x43   : > { %p1548_p2 = pnand %p1546_p13, %p1534_p9  ;;  %s1552_s29 = scalar_lea.vmem %s1551_s28, 4096 }
  0x44   : > { %p1553_p4 = scmp.lt.s32.totalorder %s169_s4, %s1551_s28  ;;  %p1554_p8 = scmp.lt.s32.totalorder %s1552_s29, %s1545_s17 }
  0x45   : > { %p1549_p6 = pneg %p1548_p2 }
  0x46   : > { %p1555_p3 = por %p1554_p8, %p1553_p4 }
  0x48   : > { %p1556_p5 = pnand %p1555_p3, %p1549_p6 }
  0x4a   : > { %1559 = shalt.err (!%p1556_p5)
}
  0x4b   : > { %s1719_s7 = smov 256   ;;  %s1720_s6 = smov 16  }
  0x4c   : > { %1331 = dma.hbm_to_vmem [thread:$0]  (!%p1918_p12), %s167_s30, 2048, %s169_s4, %s157_s1, %s1719_s7, %s1719_s7, %s1720_s6  }
  0x4d   : > { %s1253_s12 = sshll.u32 %s1704_s20, 13  ;;  %s203_s3 = scalar_lea.vmem [#allocation8], %s1216_s21 }
  0x4e   : > { %s210_s0 = scalar_lea.hbm %s2349_s2, %s1253_s12  ;;  %s211_s14 = sshll.u32 %s203_s3, 4  ;;  %s212_s14 = int_to_ptr.vmem [resolvable:$true] %s211_s14 }
  0x4f   : > { %s1573_s28 = scalar_lea.vmem %s212_s14, 8192  ;;  %p2388_p13 = pneg %p1834_p7 }
  0x50   : > { %p1574_p9 = scmp.ne.s32.totalorder %s212_s14, %s1573_s28  ;;  %s1721_s17 = smov [#allocation8]  }
  0x51   : > { %s1578_s29 = sshll.u32 %s1721_s17, 4  ;;  %s1579_s29 = int_to_ptr.vmem [resolvable:$false] %s1578_s29 }
  0x52   : > { %p1576_p5 = pnand %p1574_p9, %p2388_p13  ;;  %s1580_s23 = scalar_lea.vmem %s1579_s29, 16384 }
  0x53   : > { %p1581_p6 = scmp.lt.s32.totalorder %s212_s14, %s1579_s29  ;;  %p1582_p12 = scmp.lt.s32.totalorder %s1580_s23, %s1573_s28 }
  0x54   : > { %p1577_p2 = pneg %p1576_p5 }
  0x55   : > { %p1583_p4 = por %p1582_p12, %p1581_p6 }
  0x57   : > { %p1584_p8 = pnand %p1583_p4, %p1577_p2 }
  0x59   : > { %1587 = shalt.err (!%p1584_p8)
}
  0x5a   : > { %1337 = dma.hbm_to_vmem [thread:$0]  (!%p1834_p7), %s210_s0, 8192, %s212_s14, %s1839_s11, %s1719_s7, %s1719_s7, %s1720_s6  }
  0x5b   : > { %223 = sbr.rel (%p1852_p11) target bundleno = 675 (0x2a3), region = 32  ;;  %s1941_s1 = sand.u32 (!%p1852_p11), 1, %s1688_s16  }
  0x5c   : > { %s1221_s21 = sshll.u32 (!%p1852_p11), %s1941_s1, 7  ;;  %s226_s30 = scalar_lea.sflag (!%p1852_p11), [#allocation4], %s1941_s1 }
  0x5d   : > { %s1945_s27 = scalar_lea.vmem (!%p1852_p11), [#allocation3], %s1221_s21 }
  0x60   : > { %1659 = dma.done.wait (%p1882_p1), %s226_s30, 2048  }
  0x61   : > { %1661 = vsyncadd (%p1882_p1), %s226_s30, 4294965248  ;;  %s234_s0 = sand.u32 1, %s1857_s25   ;;  %s236_s14 = sand.u32 1, %s1676_s13  }
  0x62   : > { %s1222_s23 = sshll.u32 %s236_s14, 10  ;;  %s235_s10 = scalar_lea.sflag [#allocation7], %s234_s0 }
  0x63   : > { %s1953_s11 = scalar_lea.vmem [#allocation6], %s1222_s23 }
  0x64   : > { %1663 = dma.done.wait (%p1889_p10), %s235_s10, 24576  }
  0x65   : > { %1665 = vsyncadd (%p1889_p10), %s235_s10, 4294942720  ;;  %s1223_s8 = sshll.u32 %s236_s14, 9  ;;  %s1961_s7 = scalar_lea.vmem [#allocation9], %s1221_s21 }
  0x66   : > { %s1959_s4 = scalar_lea.vmem [#allocation8], %s1223_s8  ;;  %p1225_p7 = scmp.ne.s32.totalorder %s1696_s18, 0 }
  0x68   : > { %287 = sbr.rel (%p1225_p7) target bundleno = 118 (0x76), region = 48 }
  0x6d   : > { %v1722_v0 = vmov 0.0  }
  0x6e   : > { %288 = vst [vmem:[#allocation2 + $0x30] sm:$0xff] %v1722_v0  ;;  %289 = vst [vmem:[#allocation2] sm:$0xff] %v1722_v0 }
  0x6f   : > { %290 = vst [vmem:[#allocation2 + $0x58] sm:$0xff] %v1722_v0  ;;  %291 = vst [vmem:[#allocation2 + $0x18] sm:$0xff] %v1722_v0 }
  0x70   : > { %292 = vst [vmem:[#allocation2 + $0x50] sm:$0xff] %v1722_v0  ;;  %293 = vst [vmem:[#allocation2 + $0x68] sm:$0xff] %v1722_v0 }
  0x71   : > { %294 = vst [vmem:[#allocation2 + $0x8] sm:$0xff] %v1722_v0  ;;  %295 = vst [vmem:[#allocation2 + $0x48] sm:$0xff] %v1722_v0 }
  0x72   : > { %296 = vst [vmem:[#allocation2 + $0x40] sm:$0xff] %v1722_v0  ;;  %297 = vst [vmem:[#allocation2 + $0x20] sm:$0xff] %v1722_v0 }
  0x73   : > { %298 = vst [vmem:[#allocation2 + $0x10] sm:$0xff] %v1722_v0  ;;  %299 = vst [vmem:[#allocation2 + $0x38] sm:$0xff] %v1722_v0 }
  0x74   : > { %300 = vst [vmem:[#allocation2 + $0x60] sm:$0xff] %v1722_v0  ;;  %301 = vst [vmem:[#allocation2 + $0x70] sm:$0xff] %v1722_v0 }
  0x75   : > { %302 = vst [vmem:[#allocation2 + $0x78] sm:$0xff] %v1722_v0  ;;  %303 = vst [vmem:[#allocation2 + $0x28] sm:$0xff] %v1722_v0 }
  0x76 PF: > { %v381_v1 = vld [vmem:[%s1953_s11 + $0x1e8] sm:$0xff]  ;;  %v380_v2 = vld [vmem:[%s1953_s11 + $0x1e0] sm:$0xff]  ;;  %v383_v15 = vld [vmem:[%s1953_s11 + $0x1f8] sm:$0xff]  ;;  %p1242_p11 = scmp.ne.s32.totalorder %s1696_s18, 1 }
  0x77   : > { %v377_v3 = vld [vmem:[%s1953_s11 + $0x1c8] sm:$0xff]  ;;  %448 = vmatprep.subr.mxu0 %v381_v1  ;;  %v376_v4 = vld [vmem:[%s1953_s11 + $0x1c0] sm:$0xff]  ;;  %v382_v16 = vld [vmem:[%s1953_s11 + $0x1f0] sm:$0xff]  ;;  %561 = vmatprep.subr.mxu1 %v383_v15 }
  0x78   : > { %449 = vmatpush1.msra.mxu0 %v380_v2  ;;  %v373_v5 = vld [vmem:[%s1953_s11 + $0x1a8] sm:$0xff]  ;;  %v372_v6 = vld [vmem:[%s1953_s11 + $0x1a0] sm:$0xff]  ;;  %v379_v18 = vld [vmem:[%s1953_s11 + $0x1d8] sm:$0xff]  ;;  %562 = vmatpush1.msra.mxu1 %v382_v16 }
  0x79   : > { %450 = vmatprep.subr.mxu0 %v377_v3  ;;  %v369_v7 = vld [vmem:[%s1953_s11 + $0x188] sm:$0xff]  ;;  %v368_v8 = vld [vmem:[%s1953_s11 + $0x180] sm:$0xff]  ;;  %v378_v20 = vld [vmem:[%s1953_s11 + $0x1d0] sm:$0xff]  ;;  %563 = vmatprep.subr.mxu1 %v379_v18 }
  0x7a   : > { %451 = vmatpush1.msra.mxu0 %v376_v4  ;;  %v365_v9 = vld [vmem:[%s1953_s11 + $0x168] sm:$0xff]  ;;  %v364_v10 = vld [vmem:[%s1953_s11 + $0x160] sm:$0xff]  ;;  %v375_v21 = vld [vmem:[%s1953_s11 + $0x1b8] sm:$0xff]  ;;  %564 = vmatpush1.msra.mxu1 %v378_v20 }
  0x7b   : > { %452 = vmatprep.subr.mxu0 %v373_v5  ;;  %v361_v11 = vld [vmem:[%s1953_s11 + $0x148] sm:$0xff]  ;;  %v360_v12 = vld [vmem:[%s1953_s11 + $0x140] sm:$0xff]  ;;  %v374_v23 = vld [vmem:[%s1953_s11 + $0x1b0] sm:$0xff]  ;;  %565 = vmatprep.subr.mxu1 %v375_v21 }
  0x7c   : > { %453 = vmatpush1.msra.mxu0 %v372_v6  ;;  %v357_v13 = vld [vmem:[%s1953_s11 + $0x128] sm:$0xff]  ;;  %v356_v14 = vld [vmem:[%s1953_s11 + $0x120] sm:$0xff]  ;;  %v371_v25 = vld [vmem:[%s1953_s11 + $0x198] sm:$0xff]  ;;  %566 = vmatpush1.msra.mxu1 %v374_v23 }
  0x7d   : > { %454 = vmatprep.subr.mxu0 %v369_v7  ;;  %v353_v17 = vld [vmem:[%s1953_s11 + $0x108] sm:$0xff]  ;;  %v352_v19 = vld [vmem:[%s1953_s11 + $0x100] sm:$0xff]  ;;  %v370_v27 = vld [vmem:[%s1953_s11 + $0x190] sm:$0xff]  ;;  %567 = vmatprep.subr.mxu1 %v371_v25 }
  0x7e   : > { %455 = vmatpush1.msra.mxu0 %v368_v8  ;;  %v349_v22 = vld [vmem:[%s1953_s11 + $0xe8] sm:$0xff]  ;;  %v348_v24 = vld [vmem:[%s1953_s11 + $0xe0] sm:$0xff]  ;;  %v367_v29 = vld [vmem:[%s1953_s11 + $0x178] sm:$0xff]  ;;  %568 = vmatpush1.msra.mxu1 %v370_v27 }
  0x7f   : > { %456 = vmatprep.subr.mxu0 %v365_v9  ;;  %v345_v26 = vld [vmem:[%s1953_s11 + $0xc8] sm:$0xff]  ;;  %v344_v28 = vld [vmem:[%s1953_s11 + $0xc0] sm:$0xff]  ;;  %v366_v31 = vld [vmem:[%s1953_s11 + $0x170] sm:$0xff]  ;;  %569 = vmatprep.subr.mxu1 %v367_v29 }
  0x80   : > { %457 = vmatpush1.msra.mxu0 %v364_v10  ;;  %v341_v30 = vld [vmem:[%s1953_s11 + $0xa8] sm:$0xff]  ;;  %v340_v32 = vld [vmem:[%s1953_s11 + $0xa0] sm:$0xff]  ;;  %v363_v33 = vld [vmem:[%s1953_s11 + $0x158] sm:$0xff]  ;;  %570 = vmatpush1.msra.mxu1 %v366_v31 }
  0x81   : > { %458 = vmatprep.subr.mxu0 %v361_v11  ;;  %v337_v34 = vld [vmem:[%s1953_s11 + $0x88] sm:$0xff]  ;;  %v362_v35 = vld [vmem:[%s1953_s11 + $0x150] sm:$0xff]  ;;  %v336_v36 = vld [vmem:[%s1953_s11 + $0x80] sm:$0xff]  ;;  %571 = vmatprep.subr.mxu1 %v363_v33 }
  0x82   : > { %459 = vmatpush1.msra.mxu0 %v360_v12  ;;  %v359_v37 = vld [vmem:[%s1953_s11 + $0x138] sm:$0xff]  ;;  %v333_v38 = vld [vmem:[%s1953_s11 + $0x68] sm:$0xff]  ;;  %v358_v39 = vld [vmem:[%s1953_s11 + $0x130] sm:$0xff]  ;;  %572 = vmatpush1.msra.mxu1 %v362_v35 }
  0x83   : > { %460 = vmatprep.subr.mxu0 %v357_v13  ;;  %v332_v40 = vld [vmem:[%s1953_s11 + $0x60] sm:$0xff]  ;;  %v355_v41 = vld [vmem:[%s1953_s11 + $0x118] sm:$0xff]  ;;  %v329_v42 = vld [vmem:[%s1953_s11 + $0x48] sm:$0xff]  ;;  %573 = vmatprep.subr.mxu1 %v359_v37 }
  0x84   : > { %461 = vmatpush1.msra.mxu0 %v356_v14  ;;  %v354_v43 = vld [vmem:[%s1953_s11 + $0x110] sm:$0xff]  ;;  %v328_v44 = vld [vmem:[%s1953_s11 + $0x40] sm:$0xff]  ;;  %574 = vmatpush1.msra.mxu1 %v358_v39  ;;  %v351_v45 = vld [vmem:[%s1953_s11 + $0xf8] sm:$0xff] }
  0x85   : > { %462 = vmatprep.subr.mxu0 %v353_v17  ;;  %v325_v46 = vld [vmem:[%s1953_s11 + $0x28] sm:$0xff]  ;;  %575 = vmatprep.subr.mxu1 %v355_v41  ;;  %v350_v47 = vld [vmem:[%s1953_s11 + $0xf0] sm:$0xff]  ;;  %v324_v48 = vld [vmem:[%s1953_s11 + $0x20] sm:$0xff] }
  0x86   : > { %463 = vmatpush1.msra.mxu0 %v352_v19  ;;  %576 = vmatpush1.msra.mxu1 %v354_v43  ;;  %v347_v49 = vld [vmem:[%s1953_s11 + $0xd8] sm:$0xff]  ;;  %v321_v50 = vld [vmem:[%s1953_s11 + $0x8] sm:$0xff]  ;;  %v346_v51 = vld [vmem:[%s1953_s11 + $0xd0] sm:$0xff] }
  0x87   : > { %464 = vmatprep.subr.mxu0 %v349_v22  ;;  %577 = vmatprep.subr.mxu1 %v351_v45  ;;  %v320_v52 = vld [vmem:[%s1953_s11] sm:$0xff]  ;;  %v343_v53 = vld [vmem:[%s1953_s11 + $0xb8] sm:$0xff]  ;;  %v445_v54 = vld [vmem:[%s1953_s11 + $0x3e8] sm:$0xff] }
  0x88   : > { %465 = vmatpush1.msra.mxu0 %v348_v24  ;;  %578 = vmatpush1.msra.mxu1 %v350_v47  ;;  %v342_v55 = vld [vmem:[%s1953_s11 + $0xb0] sm:$0xff]  ;;  %v444_v56 = vld [vmem:[%s1953_s11 + $0x3e0] sm:$0xff]  ;;  %v339_v57 = vld [vmem:[%s1953_s11 + $0x98] sm:$0xff] }
  0x89   : > { %466 = vmatprep.subr.mxu0 %v345_v26  ;;  %579 = vmatprep.subr.mxu1 %v347_v49  ;;  %v441_v58 = vld [vmem:[%s1953_s11 + $0x3c8] sm:$0xff]  ;;  %v338_v59 = vld [vmem:[%s1953_s11 + $0x90] sm:$0xff]  ;;  %v440_v60 = vld [vmem:[%s1953_s11 + $0x3c0] sm:$0xff] }
  0x8a   : > { %467 = vmatpush1.msra.mxu0 %v344_v28  ;;  %580 = vmatpush1.msra.mxu1 %v346_v51  ;;  %v335_v61 = vld [vmem:[%s1953_s11 + $0x78] sm:$0xff]  ;;  %v437_v62 = vld [vmem:[%s1953_s11 + $0x3a8] sm:$0xff]  ;;  %v334_v63 = vld [vmem:[%s1953_s11 + $0x70] sm:$0xff] }
  0x8b   : > { %468 = vmatprep.subr.mxu0 %v341_v30  ;;  %581 = vmatprep.subr.mxu1 %v343_v53  ;;  %v436_v0 = vld [vmem:[%s1953_s11 + $0x3a0] sm:$0xff]  ;;  %v331_v1 = vld [vmem:[%s1953_s11 + $0x58] sm:$0xff]  ;;  %v433_v2 = vld [vmem:[%s1953_s11 + $0x388] sm:$0xff] }
  0x8c   : > { %469 = vmatpush1.msra.mxu0 %v340_v32  ;;  %582 = vmatpush1.msra.mxu1 %v342_v55  ;;  %v330_v3 = vld [vmem:[%s1953_s11 + $0x50] sm:$0xff]  ;;  %v432_v4 = vld [vmem:[%s1953_s11 + $0x380] sm:$0xff]  ;;  %v327_v5 = vld [vmem:[%s1953_s11 + $0x38] sm:$0xff] }
  0x8d   : > { %470 = vmatprep.subr.mxu0 %v337_v34  ;;  %583 = vmatprep.subr.mxu1 %v339_v57  ;;  %v429_v6 = vld [vmem:[%s1953_s11 + $0x368] sm:$0xff]  ;;  %v326_v7 = vld [vmem:[%s1953_s11 + $0x30] sm:$0xff]  ;;  %v428_v8 = vld [vmem:[%s1953_s11 + $0x360] sm:$0xff] }
  0x8e   : > { %471 = vmatpush1.msra.mxu0 %v336_v36  ;;  %584 = vmatpush1.msra.mxu1 %v338_v59  ;;  %v323_v9 = vld [vmem:[%s1953_s11 + $0x18] sm:$0xff]  ;;  %v425_v10 = vld [vmem:[%s1953_s11 + $0x348] sm:$0xff]  ;;  %v424_v12 = vld [vmem:[%s1953_s11 + $0x340] sm:$0xff] }
  0x8f   : > { %472 = vmatprep.subr.mxu0 %v333_v38  ;;  %585 = vmatprep.subr.mxu1 %v335_v61  ;;  %v2039_v11 = vld [vmem:[%s1945_s27 + $0x8] sm:$0xff]  ;;  %v322_v13 = vld [vmem:[%s1953_s11 + $0x10] sm:$0xff]  ;;  %v447_v15 = vld [vmem:[%s1953_s11 + $0x3f8] sm:$0xff] }
  0x90   : > { %473 = vmatpush1.msra.mxu0 %v332_v40  ;;  %586 = vmatpush1.msra.mxu1 %v334_v63  ;;  %v421_v14 = vld [vmem:[%s1953_s11 + $0x328] sm:$0xff]  ;;  %v420_v16 = vld [vmem:[%s1953_s11 + $0x320] sm:$0xff]  ;;  %v446_v17 = vld [vmem:[%s1953_s11 + $0x3f0] sm:$0xff] }
  0x91   : > { %474 = vmatprep.subr.mxu0 %v329_v42  ;;  %587 = vmatprep.subr.mxu1 %v331_v1  ;;  %v417_v18 = vld [vmem:[%s1953_s11 + $0x308] sm:$0xff]  ;;  %v443_v19 = vld [vmem:[%s1953_s11 + $0x3d8] sm:$0xff]  ;;  %v416_v20 = vld [vmem:[%s1953_s11 + $0x300] sm:$0xff] }
  0x92   : > { %475 = vmatpush1.msra.mxu0 %v328_v44  ;;  %588 = vmatpush1.msra.mxu1 %v330_v3  ;;  %v442_v21 = vld [vmem:[%s1953_s11 + $0x3d0] sm:$0xff]  ;;  %v413_v22 = vld [vmem:[%s1953_s11 + $0x2e8] sm:$0xff]  ;;  %v439_v23 = vld [vmem:[%s1953_s11 + $0x3b8] sm:$0xff] }
  0x93   : > { %476 = vmatprep.subr.mxu0 %v325_v46  ;;  %589 = vmatprep.subr.mxu1 %v327_v5  ;;  %v412_v24 = vld [vmem:[%s1953_s11 + $0x2e0] sm:$0xff]  ;;  %v438_v25 = vld [vmem:[%s1953_s11 + $0x3b0] sm:$0xff]  ;;  %v409_v26 = vld [vmem:[%s1953_s11 + $0x2c8] sm:$0xff] }
  0x94   : > { %477 = vmatpush1.msra.mxu0 %v324_v48  ;;  %590 = vmatpush1.msra.mxu1 %v326_v7  ;;  %v435_v27 = vld [vmem:[%s1953_s11 + $0x398] sm:$0xff]  ;;  %v408_v28 = vld [vmem:[%s1953_s11 + $0x2c0] sm:$0xff]  ;;  %v434_v29 = vld [vmem:[%s1953_s11 + $0x390] sm:$0xff] }
  0x95   : > { %478 = vmatprep.subr.mxu0 %v321_v50  ;;  %591 = vmatprep.subr.mxu1 %v323_v9  ;;  %v405_v30 = vld [vmem:[%s1953_s11 + $0x2a8] sm:$0xff]  ;;  %v431_v31 = vld [vmem:[%s1953_s11 + $0x378] sm:$0xff]  ;;  %v404_v32 = vld [vmem:[%s1953_s11 + $0x2a0] sm:$0xff] }
  0x96   : > { %479 = vmatpush1.msra.mxu0 %v320_v52  ;;  %512 = vmatprep.mubr.f32.mxu0 %v2039_v11  ;;  %v430_v33 = vld [vmem:[%s1953_s11 + $0x370] sm:$0xff]  ;;  %v401_v34 = vld [vmem:[%s1953_s11 + $0x288] sm:$0xff]  ;;  %v427_v35 = vld [vmem:[%s1953_s11 + $0x358] sm:$0xff] }
  0x97   : > { %480 = vmatprep.subr.mxu0 %v445_v54  ;;  %592 = vmatpush1.msra.mxu1 %v322_v13  ;;  %v400_v36 = vld [vmem:[%s1953_s11 + $0x280] sm:$0xff]  ;;  %v426_v37 = vld [vmem:[%s1953_s11 + $0x350] sm:$0xff]  ;;  %v397_v38 = vld [vmem:[%s1953_s11 + $0x268] sm:$0xff] }
  0x98   : > { %481 = vmatpush2.msra.mxu0 %v444_v56  ;;  %593 = vmatprep.subr.mxu1 %v447_v15  ;;  %v423_v39 = vld [vmem:[%s1953_s11 + $0x338] sm:$0xff]  ;;  %v396_v40 = vld [vmem:[%s1953_s11 + $0x260] sm:$0xff]  ;;  %v422_v41 = vld [vmem:[%s1953_s11 + $0x330] sm:$0xff] }
  0x99   : > { %482 = vmatprep.subr.mxu0 %v441_v58  ;;  %594 = vmatpush2.msra.mxu1 %v446_v17  ;;  %v393_v42 = vld [vmem:[%s1953_s11 + $0x248] sm:$0xff]  ;;  %v419_v43 = vld [vmem:[%s1953_s11 + $0x318] sm:$0xff]  ;;  %v392_v44 = vld [vmem:[%s1953_s11 + $0x240] sm:$0xff] }
  0x9a   : > { %483 = vmatpush2.msra.mxu0 %v440_v60  ;;  %595 = vmatprep.subr.mxu1 %v443_v19  ;;  %v418_v45 = vld [vmem:[%s1953_s11 + $0x310] sm:$0xff]  ;;  %v389_v46 = vld [vmem:[%s1953_s11 + $0x228] sm:$0xff]  ;;  %v415_v47 = vld [vmem:[%s1953_s11 + $0x2f8] sm:$0xff] }
  0x9b   : > { %484 = vmatprep.subr.mxu0 %v437_v62  ;;  %596 = vmatpush2.msra.mxu1 %v442_v21  ;;  %v388_v48 = vld [vmem:[%s1953_s11 + $0x220] sm:$0xff]  ;;  %v414_v49 = vld [vmem:[%s1953_s11 + $0x2f0] sm:$0xff]  ;;  %v385_v50 = vld [vmem:[%s1953_s11 + $0x208] sm:$0xff] }
  0x9c   : > { %485 = vmatpush2.msra.mxu0 %v436_v0  ;;  %597 = vmatprep.subr.mxu1 %v439_v23  ;;  %v411_v51 = vld [vmem:[%s1953_s11 + $0x2d8] sm:$0xff]  ;;  %v384_v52 = vld [vmem:[%s1953_s11 + $0x200] sm:$0xff]  ;;  %v410_v53 = vld [vmem:[%s1953_s11 + $0x2d0] sm:$0xff] }
  0x9d   : > { %486 = vmatprep.subr.mxu0 %v433_v2  ;;  %598 = vmatpush2.msra.mxu1 %v438_v25  ;;  %v304_v54 = vld [vmem:[%s1945_s27] sm:$0xff]  ;;  %v407_v55 = vld [vmem:[%s1953_s11 + $0x2b8] sm:$0xff]  ;;  %v406_v57 = vld [vmem:[%s1953_s11 + $0x2b0] sm:$0xff] }
  0x9e   : > { %487 = vmatpush2.msra.mxu0 %v432_v4  ;;  %599 = vmatprep.subr.mxu1 %v435_v27  ;;  %v307_v56 = vld [vmem:[%s1945_s27 + $0x18] sm:$0xff]  ;;  %v402_v59 = vld [vmem:[%s1953_s11 + $0x290] sm:$0xff]  ;;  %v309_v63 = vld [vmem:[%s1945_s27 + $0x28] sm:$0xff] }
  0x9f   : > { %488 = vmatprep.subr.mxu0 %v429_v6  ;;  %600 = vmatpush2.msra.mxu1 %v434_v29  ;;  %v403_v58 = vld [vmem:[%s1953_s11 + $0x298] sm:$0xff]  ;;  %v306_v61 = vld [vmem:[%s1945_s27 + $0x10] sm:$0xff]  ;;  %v847_v4 = vld [vmem:[%s1959_s4 + $0xe8] sm:$0xff] }
  0xa0   : > { %489 = vmatpush2.msra.mxu0 %v428_v8  ;;  %601 = vmatprep.subr.mxu1 %v431_v31  ;;  %v849_v60 = vld [vmem:[%s1959_s4 + $0xf8] sm:$0xff]  ;;  %v398_v0 = vld [vmem:[%s1953_s11 + $0x270] sm:$0xff]  ;;  %v308_v5 = vld [vmem:[%s1945_s27 + $0x20] sm:$0xff] }
  0xa1   : > { %490 = vmatprep.subr.mxu0 %v425_v10  ;;  %602 = vmatpush2.msra.mxu1 %v430_v33  ;;  %v399_v62 = vld [vmem:[%s1953_s11 + $0x278] sm:$0xff]  ;;  %v848_v2 = vld [vmem:[%s1959_s4 + $0xf0] sm:$0xff]  ;;  %v846_v10 = vld [vmem:[%s1959_s4 + $0xe0] sm:$0xff] }
  0xa2   : > { %491 = vmatpush2.msra.mxu0 %v424_v12  ;;  %603 = vmatprep.subr.mxu1 %v427_v35  ;;  %v395_v1 = vld [vmem:[%s1953_s11 + $0x258] sm:$0xff]  ;;  %v394_v3 = vld [vmem:[%s1953_s11 + $0x250] sm:$0xff]  ;;  %v312_v17 = vld [vmem:[%s1945_s27 + $0x40] sm:$0xff] }
  0xa3   : > { %492 = vmatprep.subr.mxu0 %v421_v14  ;;  %604 = vmatpush2.msra.mxu1 %v426_v37  ;;  %v391_v6 = vld [vmem:[%s1953_s11 + $0x238] sm:$0xff]  ;;  %v390_v8 = vld [vmem:[%s1953_s11 + $0x230] sm:$0xff]  ;;  %v313_v14 = vld [vmem:[%s1945_s27 + $0x48] sm:$0xff] }
  0xa4   : > { %493 = vmatpush2.msra.mxu0 %v420_v16  ;;  %605 = vmatprep.subr.mxu1 %v423_v39  ;;  %v311_v7 = vld [vmem:[%s1945_s27 + $0x38] sm:$0xff]  ;;  %v310_v13 = vld [vmem:[%s1945_s27 + $0x30] sm:$0xff]  ;;  %v843_v16 = vld [vmem:[%s1959_s4 + $0xc8] sm:$0xff] }
  0xa5   : > { %494 = vmatprep.subr.mxu0 %v417_v18  ;;  %606 = vmatpush2.msra.mxu1 %v422_v41  ;;  %v387_v9 = vld [vmem:[%s1953_s11 + $0x218] sm:$0xff]  ;;  %v844_v15 = vld [vmem:[%s1959_s4 + $0xd0] sm:$0xff]  ;;  %v842_v19 = vld [vmem:[%s1959_s4 + $0xc0] sm:$0xff] }
  0xa6   : > { %495 = vmatpush2.msra.mxu0 %v416_v20  ;;  %607 = vmatprep.subr.mxu1 %v419_v43  ;;  %v845_v12 = vld [vmem:[%s1959_s4 + $0xd8] sm:$0xff]  ;;  %v314_v21 = vld [vmem:[%s1945_s27 + $0x50] sm:$0xff]  ;;  %v316_v25 = vld [vmem:[%s1945_s27 + $0x60] sm:$0xff] }
  0xa7   : > { %496 = vmatprep.subr.mxu0 %v413_v22  ;;  %608 = vmatpush2.msra.mxu1 %v418_v45  ;;  %v315_v18 = vld [vmem:[%s1945_s27 + $0x58] sm:$0xff]  ;;  %v317_v22 = vld [vmem:[%s1945_s27 + $0x68] sm:$0xff]  ;;  %v840_v23 = vld [vmem:[%s1959_s4 + $0xb0] sm:$0xff] }
  0xa8   : > { %497 = vmatpush2.msra.mxu0 %v412_v24  ;;  %609 = vmatprep.subr.mxu1 %v415_v47  ;;  %v841_v20 = vld [vmem:[%s1959_s4 + $0xb8] sm:$0xff]  ;;  %v839_v24 = vld [vmem:[%s1959_s4 + $0xa8] sm:$0xff]  ;;  %v838_v27 = vld [vmem:[%s1959_s4 + $0xa0] sm:$0xff] }
  0xa9   : > { %498 = vmatprep.subr.mxu0 %v409_v26  ;;  %610 = vmatpush2.msra.mxu1 %v414_v49  ;;  %v319_v26 = vld [vmem:[%s1945_s27 + $0x78] sm:$0xff]  ;;  %v318_v29 = vld [vmem:[%s1945_s27 + $0x70] sm:$0xff]  ;;  %v835_v31 = vld [vmem:[%s1959_s4 + $0x88] sm:$0xff] }
  0xaa   : > { %499 = vmatpush2.msra.mxu0 %v408_v28  ;;  %611 = vmatprep.subr.mxu1 %v411_v51  ;;  %v837_v28 = vld [vmem:[%s1959_s4 + $0x98] sm:$0xff]  ;;  %v831_v35 = vld [vmem:[%s1959_s4 + $0x68] sm:$0xff] }
  0xab   : > { %500 = vmatprep.subr.mxu0 %v405_v30  ;;  %612 = vmatpush2.msra.mxu1 %v410_v53  ;;  %v836_v30 = vld [vmem:[%s1959_s4 + $0x90] sm:$0xff]  ;;  %v833_v33 = vld [vmem:[%s1959_s4 + $0x78] sm:$0xff]  ;;  %v827_v39 = vld [vmem:[%s1959_s4 + $0x48] sm:$0xff] }
  0xac   : > { %501 = vmatpush2.msra.mxu0 %v404_v32  ;;  %613 = vmatprep.subr.mxu1 %v407_v55  ;;  %v834_v32 = vld [vmem:[%s1959_s4 + $0x80] sm:$0xff]  ;;  %v829_v37 = vld [vmem:[%s1959_s4 + $0x58] sm:$0xff]  ;;  %v823_v43 = vld [vmem:[%s1959_s4 + $0x28] sm:$0xff] }
  0xad   : > { %502 = vmatprep.subr.mxu0 %v401_v34  ;;  %614 = vmatpush2.msra.mxu1 %v406_v57  ;;  %v832_v34 = vld [vmem:[%s1959_s4 + $0x70] sm:$0xff]  ;;  %v825_v41 = vld [vmem:[%s1959_s4 + $0x38] sm:$0xff]  ;;  %v819_v47 = vld [vmem:[%s1959_s4 + $0x8] sm:$0xff] }
  0xae   : > { %503 = vmatpush2.msra.mxu0 %v400_v36  ;;  %615 = vmatprep.subr.mxu1 %v403_v58  ;;  %v830_v36 = vld [vmem:[%s1959_s4 + $0x60] sm:$0xff]  ;;  %v821_v45 = vld [vmem:[%s1959_s4 + $0x18] sm:$0xff]  ;;  %v879_v51 = vld [vmem:[%s1959_s4 + $0x1e8] sm:$0xff] }
  0xaf   : > { %504 = vmatprep.subr.mxu0 %v397_v38  ;;  %625 = vmatprep.mubr.f32.mxu1 %v2039_v11  ;;  %v386_v11 = vld [vmem:[%s1953_s11 + $0x210] sm:$0xff]  ;;  %v881_v49 = vld [vmem:[%s1959_s4 + $0x1f8] sm:$0xff]  ;;  %v875_v55 = vld [vmem:[%s1959_s4 + $0x1c8] sm:$0xff] }
  0xb0   : > { %505 = vmatpush2.msra.mxu0 %v396_v40  ;;  %616 = vmatpush2.msra.mxu1 %v402_v59  ;;  %v828_v38 = vld [vmem:[%s1959_s4 + $0x50] sm:$0xff]  ;;  %v826_v40 = vld [vmem:[%s1959_s4 + $0x40] sm:$0xff]  ;;  %v877_v53 = vld [vmem:[%s1959_s4 + $0x1d8] sm:$0xff] }
  0xb1   : > { %506 = vmatprep.subr.mxu0 %v393_v42  ;;  %617 = vmatprep.subr.mxu1 %v399_v62  ;;  %v824_v42 = vld [vmem:[%s1959_s4 + $0x30] sm:$0xff]  ;;  %v873_v57 = vld [vmem:[%s1959_s4 + $0x1b8] sm:$0xff]  ;;  %v871_v59 = vld [vmem:[%s1959_s4 + $0x1a8] sm:$0xff] }
  0xb2   : > { %507 = vmatpush2.msra.mxu0 %v392_v44  ;;  %618 = vmatpush2.msra.mxu1 %v398_v0  ;;  %v822_v44 = vld [vmem:[%s1959_s4 + $0x20] sm:$0xff]  ;;  %v872_v58 = vld [vmem:[%s1959_s4 + $0x1b0] sm:$0xff] }
  0xb3   : > { %508 = vmatprep.subr.mxu0 %v389_v46  ;;  %619 = vmatprep.subr.mxu1 %v395_v1  ;;  %v820_v46 = vld [vmem:[%s1959_s4 + $0x10] sm:$0xff]  ;;  %v866_v0 = vld [vmem:[%s1959_s4 + $0x180] sm:$0xff]  ;;  %v865_v1 = vld [vmem:[%s1959_s4 + $0x178] sm:$0xff] }
  0xb4   : > { %509 = vmatpush2.msra.mxu0 %v388_v48  ;;  %620 = vmatpush2.msra.mxu1 %v394_v3  ;;  %v818_v48 = vld [vmem:[%s1959_s4] sm:$0xff]  ;;  %v868_v62 = vld [vmem:[%s1959_s4 + $0x190] sm:$0xff]  ;;  %v863_v3 = vld [vmem:[%s1959_s4 + $0x168] sm:$0xff] }
  0xb5   : > { %510 = vmatprep.subr.mxu0 %v385_v50  ;;  %621 = vmatprep.subr.mxu1 %v391_v6  ;;  %v880_v50 = vld [vmem:[%s1959_s4 + $0x1f0] sm:$0xff] }
  0xb6   : > { %511 = vmatpush2.msra.mxu0 %v384_v52  ;;  %622 = vmatpush2.msra.mxu1 %v390_v8  ;;  %v878_v52 = vld [vmem:[%s1959_s4 + $0x1e0] sm:$0xff]  ;;  %v860_v6 = vld [vmem:[%s1959_s4 + $0x150] sm:$0xff] }
  0xb7   : > { %513 = vmatmul.mubr.f32.vlgmr.msra.gmra.mxu0 %v304_v54  ;;  %882 = vmatprep.subr.mxu0 %v849_v60  ;;  %v858_v8 = vld [vmem:[%s1959_s4 + $0x140] sm:$0xff] }
  0xb8   : > { %518 = vmatprep.mubr.f32.mxu0 %v307_v56  ;;  %883 = vmatpush1.msra.mxu0 %v848_v2 }
  0xb9   : > { %884 = vmatprep.subr.mxu0 %v847_v4  ;;  %623 = vmatprep.subr.mxu1 %v387_v9  ;;  %v857_v9 = vld [vmem:[%s1959_s4 + $0x138] sm:$0xff] }
  0xba   : > { %885 = vmatpush1.msra.mxu0 %v846_v10  ;;  %624 = vmatpush2.msra.mxu1 %v386_v11  ;;  %v855_v11 = vld [vmem:[%s1959_s4 + $0x128] sm:$0xff] }
  0xbb   : > { %519 = vmatmul.mubr.f32.gmra.mxu0 %v306_v61  ;;  %886 = vmatprep.subr.mxu0 %v845_v12 }
  0xbc   : > { %524 = vmatprep.mubr.f32.mxu0 %v309_v63  ;;  %626 = vmatmul.mubr.f32.vlgmr.msra.gmra.mxu1 %v304_v54  ;;  %v876_v54 = vld [vmem:[%s1959_s4 + $0x1d0] sm:$0xff] }
  0xbd   : > { %631 = vmatprep.mubr.f32.mxu1 %v307_v56  ;;  %887 = vmatpush1.msra.mxu0 %v844_v15  ;;  %v874_v56 = vld [vmem:[%s1959_s4 + $0x1c0] sm:$0xff] }
  0xbe   : > { %1256 = vmatprep.subr.mxu1 %v849_v60  ;;  %888 = vmatprep.subr.mxu0 %v843_v16  ;;  %v870_v60 = vld [vmem:[%s1959_s4 + $0x1a0] sm:$0xff] }
  0xbf   : > { %525 = vmatmul.mubr.f32.gmra.mxu0 %v308_v5  ;;  %1288 = vmatpush1.msra.mxu1 %v848_v2  ;;  %v864_v2 = vld [vmem:[%s1959_s4 + $0x170] sm:$0xff] }
  0xc0   : > { %530 = vmatprep.mubr.f32.mxu0 %v311_v7  ;;  %632 = vmatmul.mubr.f32.gmra.mxu1 %v306_v61  ;;  %v869_v61 = vld [vmem:[%s1959_s4 + $0x198] sm:$0xff] }
  0xc1   : > { %637 = vmatprep.mubr.f32.mxu1 %v309_v63  ;;  %889 = vmatpush1.msra.mxu0 %v842_v19  ;;  %v867_v63 = vld [vmem:[%s1959_s4 + $0x188] sm:$0xff] }
  0xc2   : > { %1257 = vmatprep.subr.mxu1 %v847_v4  ;;  %890 = vmatprep.subr.mxu0 %v841_v20  ;;  %v862_v4 = vld [vmem:[%s1959_s4 + $0x160] sm:$0xff] }
  0xc3   : > { %531 = vmatmul.mubr.f32.gmra.mxu0 %v310_v13  ;;  %1289 = vmatpush1.msra.mxu1 %v846_v10  ;;  %v856_v10 = vld [vmem:[%s1959_s4 + $0x130] sm:$0xff] }
  0xc4   : > { %536 = vmatprep.mubr.f32.mxu0 %v313_v14  ;;  %638 = vmatmul.mubr.f32.gmra.mxu1 %v308_v5  ;;  %v861_v5 = vld [vmem:[%s1959_s4 + $0x158] sm:$0xff] }
  0xc5   : > { %643 = vmatprep.mubr.f32.mxu1 %v311_v7  ;;  %891 = vmatpush1.msra.mxu0 %v840_v23  ;;  %v859_v7 = vld [vmem:[%s1959_s4 + $0x148] sm:$0xff] }
  0xc6   : > { %1258 = vmatprep.subr.mxu1 %v845_v12  ;;  %892 = vmatprep.subr.mxu0 %v839_v24  ;;  %v854_v12 = vld [vmem:[%s1959_s4 + $0x120] sm:$0xff] }
  0xc7   : > { %537 = vmatmul.mubr.f32.gmra.mxu0 %v312_v17  ;;  %1290 = vmatpush1.msra.mxu1 %v844_v15  ;;  %v851_v15 = vld [vmem:[%s1959_s4 + $0x108] sm:$0xff] }
  0xc8   : > { %542 = vmatprep.mubr.f32.mxu0 %v315_v18  ;;  %644 = vmatmul.mubr.f32.gmra.mxu1 %v310_v13  ;;  %v853_v13 = vld [vmem:[%s1959_s4 + $0x118] sm:$0xff] }
  0xc9   : > { %649 = vmatprep.mubr.f32.mxu1 %v313_v14  ;;  %893 = vmatpush1.msra.mxu0 %v838_v27  ;;  %v852_v14 = vld [vmem:[%s1959_s4 + $0x110] sm:$0xff] }
  0xca   : > { %1259 = vmatprep.subr.mxu1 %v843_v16  ;;  %894 = vmatprep.subr.mxu0 %v837_v28  ;;  %v850_v16 = vld [vmem:[%s1959_s4 + $0x100] sm:$0xff] }
  0xcb   : > { %543 = vmatmul.mubr.f32.gmra.mxu0 %v314_v21  ;;  %1291 = vmatpush1.msra.mxu1 %v842_v19 }
  0xcc   : > { %548 = vmatprep.mubr.f32.mxu0 %v317_v22  ;;  %650 = vmatmul.mubr.f32.gmra.mxu1 %v312_v17 }
  0xcd   : > { %655 = vmatprep.mubr.f32.mxu1 %v315_v18  ;;  %895 = vmatpush1.msra.mxu0 %v836_v30 }
  0xce   : > { %896 = vmatprep.subr.mxu0 %v835_v31  ;;  %1260 = vmatprep.subr.mxu1 %v841_v20 }
  0xcf   : > { %549 = vmatmul.mubr.f32.gmra.mxu0 %v316_v25  ;;  %1292 = vmatpush1.msra.mxu1 %v840_v23 }
  0xd0   : > { %554 = vmatprep.mubr.f32.mxu0 %v319_v26  ;;  %897 = vmatpush1.msra.mxu0 %v834_v32 }
  0xd1   : > { %656 = vmatmul.mubr.f32.gmra.mxu1 %v314_v21  ;;  %898 = vmatprep.subr.mxu0 %v833_v33 }
  0xd2   : > { %661 = vmatprep.mubr.f32.mxu1 %v317_v22  ;;  %899 = vmatpush1.msra.mxu0 %v832_v34 }
  0xd3   : > { %555 = vmatmul.mubr.f32.gmra.mxu0 %v318_v29  ;;  %900 = vmatprep.subr.mxu0 %v831_v35 }
  0xd4   : > { %1261 = vmatprep.subr.mxu1 %v839_v24  ;;  %901 = vmatpush1.msra.mxu0 %v830_v36 }
  0xd5   : > { %1293 = vmatpush1.msra.mxu1 %v838_v27  ;;  %902 = vmatprep.subr.mxu0 %v829_v37 }
  0xd6   : > { %662 = vmatmul.mubr.f32.gmra.mxu1 %v316_v25  ;;  %903 = vmatpush1.msra.mxu0 %v828_v38 }
  0xd7   : > { %667 = vmatprep.mubr.f32.mxu1 %v319_v26  ;;  %904 = vmatprep.subr.mxu0 %v827_v39 }
  0xd8   : > { %1262 = vmatprep.subr.mxu1 %v837_v28  ;;  %905 = vmatpush1.msra.mxu0 %v826_v40 }
  0xd9   : > { %1294 = vmatpush1.msra.mxu1 %v836_v30  ;;  %906 = vmatprep.subr.mxu0 %v825_v41 }
  0xda   : > { %668 = vmatmul.mubr.f32.gmra.mxu1 %v318_v29  ;;  %1263 = vmatprep.subr.mxu1 %v835_v31 }
  0xdb   : > { %1295 = vmatpush1.msra.mxu1 %v834_v32  ;;  %907 = vmatpush1.msra.mxu0 %v824_v42 }
  0xdc   : > { %1264 = vmatprep.subr.mxu1 %v833_v33  ;;  %908 = vmatprep.subr.mxu0 %v823_v43 }
  0xdd   : > { %1296 = vmatpush1.msra.mxu1 %v832_v34  ;;  %909 = vmatpush1.msra.mxu0 %v822_v44 }
  0xde   : > { %1265 = vmatprep.subr.mxu1 %v831_v35  ;;  %910 = vmatprep.subr.mxu0 %v821_v45 }
  0xdf   : > { %1297 = vmatpush1.msra.mxu1 %v830_v36  ;;  %911 = vmatpush1.msra.mxu0 %v820_v46 }
  0xe0   : > { %1266 = vmatprep.subr.mxu1 %v829_v37  ;;  %912 = vmatprep.subr.mxu0 %v819_v47 }
  0xe1   : > { %1298 = vmatpush1.msra.mxu1 %v828_v38  ;;  %913 = vmatpush1.msra.mxu0 %v818_v48 }
  0xe2   : > { %1267 = vmatprep.subr.mxu1 %v827_v39  ;;  %914 = vmatprep.subr.mxu0 %v881_v49 }
  0xe3   : > { %1299 = vmatpush1.msra.mxu1 %v826_v40  ;;  %915 = vmatpush2.msra.mxu0 %v880_v50 }
  0xe4   : > { %1268 = vmatprep.subr.mxu1 %v825_v41  ;;  %916 = vmatprep.subr.mxu0 %v879_v51 }
  0xe5   : > { %1300 = vmatpush1.msra.mxu1 %v824_v42  ;;  %917 = vmatpush2.msra.mxu0 %v878_v52 }
  0xe6   : > { %1269 = vmatprep.subr.mxu1 %v823_v43  ;;  %918 = vmatprep.subr.mxu0 %v877_v53 }
  0xe7   : > { %1301 = vmatpush1.msra.mxu1 %v822_v44  ;;  %919 = vmatpush2.msra.mxu0 %v876_v54 }
  0xe8   : > { %1270 = vmatprep.subr.mxu1 %v821_v45  ;;  %920 = vmatprep.subr.mxu0 %v875_v55 }
  0xe9   : > { %1302 = vmatpush1.msra.mxu1 %v820_v46  ;;  %921 = vmatpush2.msra.mxu0 %v874_v56 }
  0xea   : > { %1271 = vmatprep.subr.mxu1 %v819_v47  ;;  %922 = vmatprep.subr.mxu0 %v873_v57 }
  0xeb   : > { %1303 = vmatpush1.msra.mxu1 %v818_v48  ;;  %923 = vmatpush2.msra.mxu0 %v872_v58 }
  0xec   : > { %1272 = vmatprep.subr.mxu1 %v881_v49  ;;  %924 = vmatprep.subr.mxu0 %v871_v59 }
  0xed   : > { %1304 = vmatpush2.msra.mxu1 %v880_v50  ;;  %925 = vmatpush2.msra.mxu0 %v870_v60 }
  0xee   : > { %1273 = vmatprep.subr.mxu1 %v879_v51  ;;  %926 = vmatprep.subr.mxu0 %v869_v61 }
  0xef   : > { %1305 = vmatpush2.msra.mxu1 %v878_v52  ;;  %927 = vmatpush2.msra.mxu0 %v868_v62 }
  0xf0   : > { %1274 = vmatprep.subr.mxu1 %v877_v53  ;;  %928 = vmatprep.subr.mxu0 %v867_v63 }
  0xf1   : > { %1306 = vmatpush2.msra.mxu1 %v876_v54  ;;  %929 = vmatpush2.msra.mxu0 %v866_v0 }
  0xf2   : > { %1275 = vmatprep.subr.mxu1 %v875_v55  ;;  %930 = vmatprep.subr.mxu0 %v865_v1 }
  0xf3   : > { %1307 = vmatpush2.msra.mxu1 %v874_v56  ;;  %931 = vmatpush2.msra.mxu0 %v864_v2 }
  0xf4   : > { %1276 = vmatprep.subr.mxu1 %v873_v57  ;;  %932 = vmatprep.subr.mxu0 %v863_v3 }
  0xf5   : > { %1308 = vmatpush2.msra.mxu1 %v872_v58  ;;  %933 = vmatpush2.msra.mxu0 %v862_v4 }
  0xf6   : > { %1277 = vmatprep.subr.mxu1 %v871_v59  ;;  %934 = vmatprep.subr.mxu0 %v861_v5 }
  0xf7   : > { %1309 = vmatpush2.msra.mxu1 %v870_v60  ;;  %935 = vmatpush2.msra.mxu0 %v860_v6 }
  0xf8   : > { %1278 = vmatprep.subr.mxu1 %v869_v61  ;;  %936 = vmatprep.subr.mxu0 %v859_v7 }
  0xf9   : > { %1310 = vmatpush2.msra.mxu1 %v868_v62  ;;  %937 = vmatpush2.msra.mxu0 %v858_v8 }
  0xfa   : > { %1279 = vmatprep.subr.mxu1 %v867_v63  ;;  %938 = vmatprep.subr.mxu0 %v857_v9 }
  0xfb   : > { %1311 = vmatpush2.msra.mxu1 %v866_v0  ;;  %939 = vmatpush2.msra.mxu0 %v856_v10 }
  0xfc   : > { %1280 = vmatprep.subr.mxu1 %v865_v1  ;;  %940 = vmatprep.subr.mxu0 %v855_v11 }
  0xfd   : > { %1312 = vmatpush2.msra.mxu1 %v864_v2  ;;  %941 = vmatpush2.msra.mxu0 %v854_v12 }
  0xfe   : > { %1281 = vmatprep.subr.mxu1 %v863_v3  ;;  %942 = vmatprep.subr.mxu0 %v853_v13 }
  0xff   : > { %1313 = vmatpush2.msra.mxu1 %v862_v4  ;;  %943 = vmatpush2.msra.mxu0 %v852_v14 }
 0x100   : > { %1282 = vmatprep.subr.mxu1 %v861_v5  ;;  %944 = vmatprep.subr.mxu0 %v851_v15 }
 0x101   : > { %1314 = vmatpush2.msra.mxu1 %v860_v6  ;;  %945 = vmatpush2.msra.mxu0 %v850_v16 }
 0x102   : > { %1283 = vmatprep.subr.mxu1 %v859_v7 }
 0x103   : > { %1315 = vmatpush2.msra.mxu1 %v858_v8 }
 0x104   : > { %1284 = vmatprep.subr.mxu1 %v857_v9 }
 0x105   : > { %1316 = vmatpush2.msra.mxu1 %v856_v10 }
 0x106   : > { %1285 = vmatprep.subr.mxu1 %v855_v11 }
 0x107   : > { %1317 = vmatpush2.msra.mxu1 %v854_v12 }
 0x108   : > { %1286 = vmatprep.subr.mxu1 %v853_v13 }
 0x109   : > { %1318 = vmatpush2.msra.mxu1 %v852_v14 }
 0x10a   : > { %1287 = vmatprep.subr.mxu1 %v851_v15 }
 0x10b   : > { %1319 = vmatpush2.msra.mxu1 %v850_v16 }
 0x177   : > { %v2176_v17 = vpop.f32.mrf.mxu0 }
 0x178   : > { %v1226_v18 = vmul.f32 -1.442695, %v2176_v17 }
 0x179   : > { %v2179_v19 = vpop.f32.mrf.mxu0 }
 0x17a   : > { %1440 = vpow2.f32 %v1226_v18  ;;  %v1227_v20 = vmul.f32 -1.442695, %v2179_v19 }
 0x17b   : > { %v2182_v21 = vpop.f32.mrf.mxu0 }
 0x17c   : > { %1442 = vpow2.f32 %v1227_v20  ;;  %v1228_v22 = vmul.f32 -1.442695, %v2182_v21  ;;  %v2196_v30 = vpop.f32.mrf.mxu1 }
 0x17d   : > { %v2185_v23 = vpop.f32.mrf.mxu0 }
 0x17e   : > { %1444 = vpow2.f32 %v1228_v22  ;;  %v1229_v24 = vmul.f32 -1.442695, %v2185_v23  ;;  %v2201_v33 = vpop.f32.mrf.mxu1 }
 0x17f   : > { %v2188_v25 = vpop.f32.mrf.mxu0 }
 0x180   : > { %1446 = vpow2.f32 %v1229_v24  ;;  %v1230_v26 = vmul.f32 -1.442695, %v2188_v25  ;;  %v2206_v37 = vpop.f32.mrf.mxu1 }
 0x181   : > { %v2191_v27 = vpop.f32.mrf.mxu0 }
 0x182   : > { %1448 = vpow2.f32 %v1230_v26  ;;  %v1231_v28 = vmul.f32 -1.442695, %v2191_v27  ;;  %v2211_v42 = vpop.f32.mrf.mxu1 }
 0x183   : > { %v2194_v29 = vpop.f32.mrf.mxu0 }
 0x184   : > { %1450 = vpow2.f32 %v1231_v28  ;;  %v1232_v31 = vmul.f32 -1.442695, %v2194_v29  ;;  %v2217_v49 = vpop.f32.mrf.mxu1 }
 0x185   : > { %v2199_v32 = vpop.f32.mrf.mxu0 }
 0x186   : > { %1452 = vpow2.f32 %v1232_v31  ;;  %v1233_v34 = vmul.f32 -1.442695, %v2199_v32  ;;  %v2225_v58 = vpop.f32.mrf.mxu1 }
 0x187   : > { %v1441_v35 = vpop.eup %1440  ;;  %v2204_v36 = vpop.f32.mrf.mxu0 }
 0x188   : > { %v722_v38 = vadd.f32 1.0, %v1441_v35  ;;  %1454 = vpow2.f32 %v1233_v34  ;;  %v1234_v39 = vmul.f32 -1.442695, %v2204_v36  ;;  %v2233_v3 = vpop.f32.mrf.mxu1 }
 0x189   : > { %v1443_v40 = vpop.eup %1442  ;;  %v2209_v41 = vpop.f32.mrf.mxu0 }
 0x18a   : > { %1456 = vrcp.f32 %v722_v38  ;;  %v723_v43 = vadd.f32 1.0, %v1443_v40  ;;  %v1235_v44 = vmul.f32 -1.442695, %v2209_v41  ;;  %v647_v10 = vpop.f32.mrf.mxu1 }
 0x18b   : > { %v1445_v45 = vpop.eup %1444  ;;  %1458 = vpow2.f32 %v1234_v39  ;;  %v2214_v46 = vpop.f32.mrf.mxu0 }
 0x18c   : > { %1460 = vrcp.f32 %v723_v43  ;;  %v724_v47 = vadd.f32 1.0, %v1445_v45  ;;  %v1236_v48 = vmul.f32 -1.442695, %v2214_v46  ;;  %v651_v24 = vpop.f32.mrf.mxu1 }
 0x18d   : > { %v1447_v50 = vpop.eup %1446  ;;  %1462 = vpow2.f32 %v1235_v44  ;;  %v2219_v51 = vpop.f32.mrf.mxu0 }
 0x18e   : > { %1464 = vrcp.f32 %v724_v47  ;;  %v725_v52 = vadd.f32 1.0, %v1447_v50  ;;  %v1237_v53 = vmul.f32 -1.442695, %v2219_v51 }
 0x18f   : > { %v1449_v54 = vpop.eup %1448  ;;  %1466 = vpow2.f32 %v1236_v48  ;;  %v2222_v55 = vpop.f32.mrf.mxu0 }
 0x190   : > { %1468 = vrcp.f32 %v725_v52  ;;  %v726_v56 = vadd.f32 1.0, %v1449_v54  ;;  %v1238_v57 = vmul.f32 -1.442695, %v2222_v55 }
 0x191   : > { %v1451_v59 = vpop.eup %1450  ;;  %1470 = vpow2.f32 %v1237_v53  ;;  %v2227_v60 = vpop.f32.mrf.mxu0 }
 0x192   : > { %1472 = vrcp.f32 %v726_v56  ;;  %v727_v61 = vadd.f32 1.0, %v1451_v59  ;;  %v1239_v62 = vmul.f32 -1.442695, %v2227_v60 }
 0x193   : > { %v1453_v63 = vpop.eup %1452  ;;  %1474 = vpow2.f32 %v1238_v57  ;;  %v2230_v0 = vpop.f32.mrf.mxu0 }
 0x194   : > { %1476 = vrcp.f32 %v727_v61  ;;  %v728_v1 = vadd.f32 1.0, %v1453_v63  ;;  %v1240_v2 = vmul.f32 -1.442695, %v2230_v0 }
 0x195   : > { %v1455_v4 = vpop.eup %1454  ;;  %1478 = vpow2.f32 %v1239_v62  ;;  %v2235_v5 = vpop.f32.mrf.mxu0 }
 0x196   : > { %1480 = vrcp.f32 %v728_v1  ;;  %v729_v6 = vadd.f32 1.0, %v1455_v4  ;;  %v1241_v7 = vmul.f32 -1.442695, %v2235_v5 }
 0x197   : > { %v1457_v8 = vpop.eup %1456  ;;  %1482 = vpow2.f32 %v1240_v2 }
 0x198   : > { %v1459_v9 = vpop.eup %1458  ;;  %1484 = vrcp.f32 %v729_v6  ;;  %v770_v12 = vmul.f32 %v1457_v8, %v2176_v17 }
 0x199   : > { %v1461_v11 = vpop.eup %1460  ;;  %v730_v13 = vadd.f32 1.0, %v1459_v9  ;;  %1486 = vpow2.f32 %v1241_v7 }
 0x19a   : > { %v1463_v14 = vpop.eup %1462  ;;  %v771_v15 = vmul.f32 %v1461_v11, %v2179_v19  ;;  %v786_v34 = vmul.f32 %v770_v12, %v2196_v30 }
 0x19b   : > { %v1465_v16 = vpop.eup %1464  ;;  %1488 = vrcp.f32 %v730_v13  ;;  %v731_v18 = vadd.f32 1.0, %v1463_v14 }
 0x19c   : > { %v1467_v20 = vpop.eup %1466  ;;  %v787_v22 = vmul.f32 %v771_v15, %v2201_v33  ;;  %v772_v28 = vmul.f32 %v1465_v16, %v2182_v21  ;;  %v653_v33 = vpop.f32.mrf.mxu1 }
 0x19d   : > { %v1469_v26 = vpop.eup %1468  ;;  %1490 = vrcp.f32 %v731_v18  ;;  %v732_v31 = vadd.f32 1.0, %v1467_v20 }
 0x19e   : > { %v1471_v17 = vpop.eup %1470  ;;  %v773_v35 = vmul.f32 %v1469_v26, %v2185_v23  ;;  %946 = vmatprep.mubr.f32.mxu0 %v787_v22  ;;  %v788_v45 = vmul.f32 %v772_v28, %v2206_v37  ;;  %v803_v26 = vld [vmem:[#allocation2] sm:$0xff] }
 0x19f   : > { %v1473_v38 = vpop.eup %1472  ;;  %1492 = vrcp.f32 %v732_v31  ;;  %v733_v19 = vadd.f32 1.0, %v1471_v17  ;;  %947 = vmatmul.mubr.f32.vlgmr.msra.gmra.mxu0 %v786_v34  ;;  %v804_v34 = vld [vmem:[#allocation2 + $0x58] sm:$0xff] }
 0x1a0   : > { %v1475_v39 = vpop.eup %1474  ;;  %v789_v40 = vmul.f32 %v773_v35, %v2211_v42  ;;  %v774_v44 = vmul.f32 %v1473_v38, %v2188_v25  ;;  %v657_v42 = vpop.f32.mrf.mxu1 }
 0x1a1   : > { %v1477_v43 = vpop.eup %1476  ;;  %1494 = vrcp.f32 %v733_v19  ;;  %v734_v21 = vadd.f32 1.0, %v1475_v39  ;;  %v806_v19 = vld [vmem:[#allocation2 + $0x50] sm:$0xff] }
 0x1a2   : > { %v1479_v30 = vpop.eup %1478  ;;  %v775_v47 = vmul.f32 %v1477_v43, %v2191_v27  ;;  %952 = vmatprep.mubr.f32.mxu0 %v789_v40  ;;  %v790_v56 = vmul.f32 %v774_v44, %v2217_v49  ;;  %v659_v62 = vpop.f32.mrf.mxu1 }
 0x1a3   : > { %v1481_v23 = vpop.eup %1480  ;;  %1496 = vrcp.f32 %v734_v21  ;;  %v735_v48 = vadd.f32 1.0, %v1479_v30  ;;  %953 = vmatmul.mubr.f32.gmra.mxu0 %v788_v45  ;;  %v808_v21 = vld [vmem:[#allocation2 + $0x8] sm:$0xff] }
 0x1a4   : > { %v1483_v50 = vpop.eup %1482  ;;  %v791_v52 = vmul.f32 %v775_v47, %v2225_v58  ;;  %v776_v54 = vmul.f32 %v1481_v23, %v2194_v29  ;;  %v663_v2 = vpop.f32.mrf.mxu1  ;;  %v809_v47 = vld [vmem:[#allocation2 + $0x48] sm:$0xff] }
 0x1a5   : > { %v1485_v53 = vpop.eup %1484  ;;  %1498 = vrcp.f32 %v735_v48  ;;  %v736_v25 = vadd.f32 1.0, %v1483_v50 }
 0x1a6   : > { %v1487_v37 = vpop.eup %1486  ;;  %v777_v57 = vmul.f32 %v1485_v53, %v2199_v32  ;;  %958 = vmatprep.mubr.f32.mxu0 %v791_v52  ;;  %v792_v58 = vmul.f32 %v776_v54, %v2233_v3  ;;  %v665_v3 = vpop.f32.mrf.mxu1  ;;  %v810_v52 = vld [vmem:[#allocation2 + $0x40] sm:$0xff] }
 0x1a7   : > { %1500 = vrcp.f32 %v736_v25  ;;  %v737_v27 = vadd.f32 1.0, %v1487_v37  ;;  %959 = vmatmul.mubr.f32.gmra.mxu0 %v790_v56  ;;  %v811_v53 = vld [vmem:[#allocation2 + $0x20] sm:$0xff]  ;;  %v812_v56 = vld [vmem:[#allocation2 + $0x10] sm:$0xff] }
 0x1a8   : > { %v1489_v59 = vpop.eup %1488  ;;  %v793_v61 = vmul.f32 %v777_v57, %v647_v10  ;;  %v669_v14 = vpop.f32.mrf.mxu1 }
 0x1a9   : > { %1502 = vrcp.f32 %v737_v27  ;;  %v778_v29 = vmul.f32 %v1489_v59, %v2204_v36  ;;  %v813_v27 = vld [vmem:[#allocation2 + $0x38] sm:$0xff] }
 0x1aa   : > { %v1491_v63 = vpop.eup %1490  ;;  %964 = vmatprep.mubr.f32.mxu0 %v793_v61  ;;  %v671_v20 = vpop.f32.mrf.mxu1 }
 0x1ab   : > { %v779_v1 = vmul.f32 %v1491_v63, %v2209_v41  ;;  %965 = vmatmul.mubr.f32.gmra.mxu0 %v792_v58  ;;  %v794_v7 = vmul.f32 %v778_v29, %v651_v24  ;;  %v815_v29 = vld [vmem:[#allocation2 + $0x70] sm:$0xff] }
 0x1ac   : > { %v1493_v49 = vpop.eup %1492 }
 0x1ad   : > { %v795_v32 = vmul.f32 %v779_v1, %v653_v33  ;;  %v780_v6 = vmul.f32 %v1493_v49, %v2214_v46  ;;  %v807_v33 = vld [vmem:[#allocation2 + $0x68] sm:$0xff] }
 0x1ae   : > { %v1495_v4 = vpop.eup %1494 }
 0x1af   : > { %v781_v8 = vmul.f32 %v1495_v4, %v2219_v51  ;;  %970 = vmatprep.mubr.f32.mxu1 %v795_v32  ;;  %v796_v12 = vmul.f32 %v780_v6, %v657_v42  ;;  %v817_v6 = vld [vmem:[#allocation2 + $0x28] sm:$0xff] }
 0x1b0   : > { %v1497_v9 = vpop.eup %1496  ;;  %971 = vmatmul.mubr.f32.vlgmr.msra.gmra.mxu1 %v794_v7 }
 0x1b1   : > { %v797_v10 = vmul.f32 %v781_v8, %v659_v62  ;;  %v782_v36 = vmul.f32 %v1497_v9, %v2222_v55  ;;  %v802_v55 = vld [vmem:[#allocation2 + $0x30] sm:$0xff]  ;;  %v814_v62 = vld [vmem:[#allocation2 + $0x60] sm:$0xff] }
 0x1b2   : > { %v1499_v11 = vpop.eup %1498 }
 0x1b3   : > { %v783_v41 = vmul.f32 %v1499_v11, %v2227_v60  ;;  %976 = vmatprep.mubr.f32.mxu1 %v797_v10  ;;  %v798_v51 = vmul.f32 %v782_v36, %v663_v2  ;;  %v816_v2 = vld [vmem:[#allocation2 + $0x78] sm:$0xff] }
 0x1b4   : > { %v1501_v13 = vpop.eup %1500  ;;  %977 = vmatmul.mubr.f32.gmra.mxu1 %v796_v12 }
 0x1b5   : > { %v799_v15 = vmul.f32 %v783_v41, %v665_v3  ;;  %v784_v16 = vmul.f32 %v1501_v13, %v2230_v0  ;;  %v805_v0 = vld [vmem:[#allocation2 + $0x18] sm:$0xff] }
 0x1b6   : > { %v1503_v46 = vpop.eup %1502 }
 0x1b7   : > { %v785_v18 = vmul.f32 %v1503_v46, %v2235_v5  ;;  %982 = vmatprep.mubr.f32.mxu1 %v799_v15  ;;  %v800_v24 = vmul.f32 %v784_v16, %v669_v14 }
 0x1b8   : > { %983 = vmatmul.mubr.f32.gmra.mxu1 %v798_v51 }
 0x1b9   : > { %v801_v22 = vmul.f32 %v785_v18, %v671_v20 }
 0x1bb   : > { %988 = vmatprep.mubr.f32.mxu1 %v801_v22 }
 0x1bc   : > { %989 = vmatmul.mubr.f32.gmra.mxu1 %v800_v24 }
 0x25f   : > { %v948_v60 = vpop.f32.mrf.mxu0 }
 0x260   : > { %v995_v28 = vadd.f32 %v948_v60, %v802_v55 }
 0x261   : > { %v950_v31 = vpop.f32.mrf.mxu0 }
 0x262   : > { %1011 = vst [vmem:[#allocation2 + $0x30] sm:$0xff] %v995_v28  ;;  %v996_v17 = vadd.f32 %v950_v31, %v803_v26 }
 0x263   : > { %v954_v35 = vpop.f32.mrf.mxu0 }
 0x264   : > { %1012 = vst [vmem:[#allocation2] sm:$0xff] %v996_v17  ;;  %v997_v38 = vadd.f32 %v954_v35, %v804_v34 }
 0x265   : > { %v956_v5 = vpop.f32.mrf.mxu0 }
 0x266   : > { %1013 = vst [vmem:[#allocation2 + $0x58] sm:$0xff] %v997_v38  ;;  %v998_v39 = vadd.f32 %v956_v5, %v805_v0 }
 0x267   : > { %v960_v40 = vpop.f32.mrf.mxu0 }
 0x268   : > { %1014 = vst [vmem:[#allocation2 + $0x18] sm:$0xff] %v998_v39  ;;  %v999_v43 = vadd.f32 %v960_v40, %v806_v19 }
 0x269   : > { %v962_v44 = vpop.f32.mrf.mxu0 }
 0x26a   : > { %1015 = vst [vmem:[#allocation2 + $0x50] sm:$0xff] %v999_v43  ;;  %v1000_v45 = vadd.f32 %v962_v44, %v807_v33 }
 0x26b   : > { %v966_v30 = vpop.f32.mrf.mxu0 }
 0x26c   : > { %1016 = vst [vmem:[#allocation2 + $0x68] sm:$0xff] %v1000_v45  ;;  %v1001_v23 = vadd.f32 %v966_v30, %v808_v21 }
 0x26d   : > { %v968_v48 = vpop.f32.mrf.mxu0 }
 0x26e   : > { %1017 = vst [vmem:[#allocation2 + $0x8] sm:$0xff] %v1001_v23  ;;  %v1002_v50 = vadd.f32 %v968_v48, %v809_v47 }
 0x270   : > { %1018 = vst [vmem:[#allocation2 + $0x48] sm:$0xff] %v1002_v50  ;;  %v972_v42 = vpop.f32.mrf.mxu1 }
 0x271   : > { %v1003_v54 = vadd.f32 %v972_v42, %v810_v52 }
 0x272   : > { %v974_v25 = vpop.f32.mrf.mxu1 }
 0x273   : > { %1019 = vst [vmem:[#allocation2 + $0x40] sm:$0xff] %v1003_v54  ;;  %v1004_v37 = vadd.f32 %v974_v25, %v811_v53 }
 0x274   : > { %v978_v57 = vpop.f32.mrf.mxu1 }
 0x275   : > { %1020 = vst [vmem:[#allocation2 + $0x20] sm:$0xff] %v1004_v37  ;;  %v1005_v59 = vadd.f32 %v978_v57, %v812_v56 }
 0x276   : > { %v980_v61 = vpop.f32.mrf.mxu1 }
 0x277   : > { %1021 = vst [vmem:[#allocation2 + $0x10] sm:$0xff] %v1005_v59  ;;  %v1006_v58 = vadd.f32 %v980_v61, %v813_v27 }
 0x278   : > { %v984_v63 = vpop.f32.mrf.mxu1 }
 0x279   : > { %1022 = vst [vmem:[#allocation2 + $0x38] sm:$0xff] %v1006_v58  ;;  %v1007_v1 = vadd.f32 %v984_v63, %v814_v62 }
 0x27a   : > { %v986_v49 = vpop.f32.mrf.mxu1 }
 0x27b   : > { %1023 = vst [vmem:[#allocation2 + $0x60] sm:$0xff] %v1007_v1  ;;  %v1008_v32 = vadd.f32 %v986_v49, %v815_v29 }
 0x27c   : > { %v990_v4 = vpop.f32.mrf.mxu1 }
 0x27d   : > { %1024 = vst [vmem:[#allocation2 + $0x70] sm:$0xff] %v1008_v32  ;;  %v1009_v7 = vadd.f32 %v990_v4, %v816_v2  ;;  %1030 = sbr.rel (%p1242_p11) target bundleno = 651 (0x28b), region = 52 }
 0x27e   : > { %v992_v8 = vpop.f32.mrf.mxu1 }
 0x27f   : > { %1025 = vst [vmem:[#allocation2 + $0x78] sm:$0xff] %v1009_v7  ;;  %v1010_v9 = vadd.f32 %v992_v8, %v817_v6 }
 0x281   : > { %1026 = vst [vmem:[#allocation2 + $0x28] sm:$0xff] %v1010_v9 }
 0x282   : > { %v1031_v3 = vld [vmem:[#allocation2 + $0x30] sm:$0xff]  ;;  %v1032_v10 = vld [vmem:[#allocation2] sm:$0xff]  ;;  %v1033_v11 = vld [vmem:[#allocation2 + $0x58] sm:$0xff] }
 0x283   : > { %1047 = vst [vmem:[%s1961_s7] sm:$0xff] %v1031_v3  ;;  %1048 = vst [vmem:[%s1961_s7 + $0x8] sm:$0xff] %v1032_v10  ;;  %v1034_v36 = vld [vmem:[#allocation2 + $0x18] sm:$0xff]  ;;  %v1035_v12 = vld [vmem:[#allocation2 + $0x50] sm:$0xff] }
 0x284   : > { %1049 = vst [vmem:[%s1961_s7 + $0x10] sm:$0xff] %v1033_v11  ;;  %v1036_v41 = vld [vmem:[#allocation2 + $0x68] sm:$0xff]  ;;  %1050 = vst [vmem:[%s1961_s7 + $0x18] sm:$0xff] %v1034_v36  ;;  %v1039_v15 = vld [vmem:[#allocation2 + $0x40] sm:$0xff] }
 0x285   : > { %1051 = vst [vmem:[%s1961_s7 + $0x20] sm:$0xff] %v1035_v12  ;;  %1052 = vst [vmem:[%s1961_s7 + $0x28] sm:$0xff] %v1036_v41  ;;  %v1037_v13 = vld [vmem:[#allocation2 + $0x8] sm:$0xff]  ;;  %v1040_v46 = vld [vmem:[#allocation2 + $0x20] sm:$0xff] }
 0x286   : > { %v1038_v14 = vld [vmem:[#allocation2 + $0x48] sm:$0xff]  ;;  %1053 = vst [vmem:[%s1961_s7 + $0x30] sm:$0xff] %v1037_v13  ;;  %1055 = vst [vmem:[%s1961_s7 + $0x40] sm:$0xff] %v1039_v15  ;;  %v1041_v16 = vld [vmem:[#allocation2 + $0x10] sm:$0xff] }
 0x287   : > { %1054 = vst [vmem:[%s1961_s7 + $0x38] sm:$0xff] %v1038_v14  ;;  %v1042_v51 = vld [vmem:[#allocation2 + $0x38] sm:$0xff]  ;;  %1056 = vst [vmem:[%s1961_s7 + $0x48] sm:$0xff] %v1040_v46  ;;  %v1043_v18 = vld [vmem:[#allocation2 + $0x60] sm:$0xff] }
 0x288   : > { %1057 = vst [vmem:[%s1961_s7 + $0x50] sm:$0xff] %v1041_v16  ;;  %1058 = vst [vmem:[%s1961_s7 + $0x58] sm:$0xff] %v1042_v51  ;;  %v1044_v20 = vld [vmem:[#allocation2 + $0x70] sm:$0xff]  ;;  %v1045_v22 = vld [vmem:[#allocation2 + $0x78] sm:$0xff] }
 0x289   : > { %1059 = vst [vmem:[%s1961_s7 + $0x60] sm:$0xff] %v1043_v18  ;;  %1060 = vst [vmem:[%s1961_s7 + $0x68] sm:$0xff] %v1044_v20  ;;  %v1046_v24 = vld [vmem:[#allocation2 + $0x28] sm:$0xff] }
 0x28a   : > { %1061 = vst [vmem:[%s1961_s7 + $0x70] sm:$0xff] %v1045_v22  ;;  %1062 = vst [vmem:[%s1961_s7 + $0x78] sm:$0xff] %v1046_v24 }
 0x28b PF: > { %s1255_s25 = sshll.u32 %s1700_s19, 11  ;;  %s2390_s6 = sld [smem:[#allocation24_spill]] }
 0x28c   : > { %s1078_s26 = sshll.u32 %s1961_s7, 4  ;;  %s1064_s5 = scalar_lea.sflag [#allocation5], %s1941_s1  ;;  %s2285_s26 = int_to_ptr.vmem [resolvable:$true] %s1078_s26 }
 0x28d   : > { %s1588_s3 = scalar_lea.vmem %s2285_s26, 2048  ;;  %s1723_s28 = smov [#allocation9]  }
 0x28e   : > { %p1589_p1 = scmp.ne.s32.totalorder %s2285_s26, %s1588_s3  ;;  %s1592_s17 = sshll.u32 %s1723_s28, 4  ;;  %s1593_s17 = int_to_ptr.vmem [resolvable:$false] %s1592_s17 }
 0x28f   : > { %s1594_s19 = scalar_lea.vmem %s1593_s17, 4096  ;;  %p1595_p9 = scmp.lt.s32.totalorder %s2285_s26, %s1593_s17 }
 0x290   : > { %p1590_p10 = pnand %p1589_p1, %p1895_p0  ;;  %p1596_p13 = scmp.lt.s32.totalorder %s1594_s19, %s1588_s3 }
 0x291   : > { %s2282_s12 = scalar_lea.hbm %s2390_s6, %s1255_s25 }
 0x292   : > { %p1591_p3 = pneg %p1590_p10  ;;  %p1597_p5 = por %p1596_p13, %p1595_p9 }
 0x294   : > { %p1598_p2 = pnand %p1597_p5, %p1591_p3 }
 0x296   : > { %1601 = shalt.err (!%p1598_p2)
}
 0x297   : > { %s1602_s29 = scalar_lea.hbm %s2282_s12, 2048  ;;  %s1606_s27 = scalar_lea.hbm %s2390_s6, 4096 }
 0x298   : > { %p1603_p6 = scmp.ne.s32.totalorder %s2282_s12, %s1602_s29  ;;  %p1607_p8 = scmp.lt.s32.totalorder %s2282_s12, %s2390_s6 }
 0x299   : > { %p1608_p7 = scmp.lt.s32.totalorder %s1606_s27, %s1602_s29 }
 0x29a   : > { %p1604_p12 = pnand %p1603_p6, %p1895_p0 }
 0x29b   : > { %p1609_p11 = por %p1608_p7, %p1607_p8 }
 0x29c   : > { %p1605_p4 = pneg %p1604_p12 }
 0x29e   : > { %p1610_p1 = pnand %p1609_p11, %p1605_p4 }
 0x2a0   : > { %1613 = shalt.err (!%p1610_p1)
}
 0x2a1   : > { %s1724_s23 = smov 256   ;;  %s1725_s10 = smov 16  }
 0x2a2   : > { %1326 = dma.vmem_to_hbm [thread:$0]  (%p1895_p0), %s2285_s26, 2048, %s2282_s12, %s1064_s5, %s1724_s23, %s1724_s23, %s1725_s10  }
 0x2a3 PF: > { %s2391_s11 = sld [smem:[#allocation21_spill]]  ;;  %p1343_p10 = scmp.ge.s32.totalorder %s1712_s22, 2 }
 0x2a4   : > { %s1093_s8 = sand.u32 1, %s1684_s15  }
 0x2a5   : > { %s1094_s4 = scalar_lea.sflag [#allocation5], %s1093_s8 }
 0x2a9   : > { %p2392_p3 = scmp.ne.s32.totalorder %s2391_s11, 0 }
 0x2ab   : > { %p1339_p9 = pnand %p1343_p10, %p2392_p3 }
 0x2ad   : > { %p1340_p13 = pneg %p1339_p9 }
 0x2af   : > { %1667 = dma.done.wait (%p1340_p13), %s1094_s4, 2048  }
 0x2b0   : > { %1669 = vsyncadd (%p1340_p13), %s1094_s4, 4294965248  ;;  %s22_s22 = sadd.s32 1, %s1712_s22   ;;  %s2393_s7 = sld [smem:[#allocation13_spill]] }
 0x2b1   : > { %p19_p5 = scmp.ge.s32.totalorder %s22_s22, 6   ;;  %s2394_s14 = sld [smem:[#allocation17_spill]] }
 0x2b2   : > { %s2395_s1 = sld [smem:[#allocation14_spill]]  ;;  %s2400_s12 = smov %s1676_s13 }
 0x2b3   : > { %s2396_s17 = sld [smem:[#allocation20_spill]]  ;;  %s2402_s15 = smov %s1688_s16 }
 0x2b4   : > { %s2397_s19 = sld [smem:[#allocation15_spill]]  ;;  %s2404_s18 = smov %s1704_s20 }
 0x2b5   : > { %s2398_s25 = sld [smem:[#allocation16_spill]] }
 0x2b6   : > { %s2399_s21 = sld [smem:[#allocation18_spill]]  ;;  %s2401_s13 = smov %s2393_s7 }
 0x2b7   :  { %21 = sbr.rel (!%p19_p5) target bundleno = 15 (0xf), region = 109 }
 0x2b8   : > { %s2403_s16 = smov %s2395_s1 }
 0x2bb   : > { %s2405_s20 = smov %s2398_s25 }
 0x2bc   :  { %1099 = vsyncpa [#allocation4], 1 }
 0x2bd   :  { %1101 = vsyncpa [#allocation4 + $0x1], 1 }
 0x2be   :  { %1102 = vsyncpa [#allocation7], 1 }
 0x2bf   :  { %1104 = vsyncpa [#allocation7 + $0x1], 1 }
 0x2c0   :  { %1105 = vsyncpa [#allocation5], 1 }
 0x2c1   :  { %1107 = vsyncpa [#allocation5 + $0x1], 1 }

</bundles_post_ra>
